<compile_context>
chip_gen: v7x
topology: tpu7x:2x2x1
jax: 0.10.0
libtpu: 0.0.40
codegen_flags: <defaults>
</compile_context>

<pallas_src>
import functools

import numpy as np

import jax
import jax.numpy as jnp
from jax import lax
from jax.experimental import pallas as pl
from jax.experimental.pallas import tpu as pltpu


def _upsample_conv_kernel(x_ref, c_ref, w_ref, b_ref, o_ref, *,
                          Cin, H, KH, KW, Hout, Wout, stride, rmap):
    """One batch element per grid step.

    x_ref: (1, Cin*H, W)        bf16  original (pre-upsample) image, NCHW rows
    c_ref: (W, KW*Wout)         bf16  0/1 selector: col upsample + reflect pad + kw tap
    w_ref: (Cout, KH*KW*Cin)    bf16  conv weights, columns ordered (kh, kw, ci)
    b_ref: (Cout, 1)            f32   bias
    o_ref: (1, Cout, Hout*Wout) f32   flattened NCHW output (lane-dense block)
    """
    x2 = x_ref[0]                                        # (Cin*H, W)

    # Stage 1: one MXU matmul applies nearest upsample + reflection padding +
    # every horizontal (kw) tap along the width axis.  Pure 0/1 selection, so
    # the bf16 recast below is exact.
    xc = lax.dot_general(x2, c_ref[...], (((1,), (0,)), ((), ())),
                         preferred_element_type=jnp.float32)
    xc = xc.astype(jnp.bfloat16)                         # exact (selection only)

    # Stage 2: regroup so (kw, ci) sit on the contraction axis.
    # y[kw*Cin + ci, h, ow] = xc[ci*H + h, kw*Wout + ow]
    y = jnp.stack(
        [xc[ci * H:(ci + 1) * H, kw * Wout:(kw + 1) * Wout]
         for kw in range(KW) for ci in range(Cin)],
        axis=0)                                          # (KW*Cin, H, Wout)

    # Stage 3: vertical upsample + pad + kh taps == static row gather (rmap),
    # laid out directly in flattened (oh, ow) lane order -> lane-dense im2col.
    row_cache = {}

    def gathered_rows(kh):
        pieces = []
        for oh in range(Hout):
            r = rmap[oh * stride + kh]                   # static python int
            if r not in row_cache:
                row_cache[r] = y[:, r, :]                # (KW*Cin, Wout)
            pieces.append(row_cache[r])
        return jnp.concatenate(pieces, axis=-1)          # (KW*Cin, Hout*Wout)

    p = jnp.concatenate([gathered_rows(kh) for kh in range(KH)],
                        axis=0)                          # (KH*KW*Cin, Hout*Wout)

    # Stage 4: the whole conv as ONE MXU matmul, contraction = KH*KW*Cin,
    # bf16 operands, f32 accumulation, lane-dense (Cout, Hout*Wout) result.
    acc = lax.dot_general(w_ref[...], p, (((1,), (0,)), ((), ())),
                          preferred_element_type=jnp.float32)
    acc = acc + b_ref[...]                               # f32 bias add on the VPU
    o_ref[0] = acc


def upsample_conv_layer(x_nchw, weight, bias, *, kernel_size, stride=1, upsample=None):
    """Forward pass of UpsampleConvolutionalLayer.

    x_nchw: (N, Cin, H, W) float32
    weight: (Cout, Cin, KH, KW)  (PyTorch Conv2d layout)
    bias:   (Cout,)
    returns (N, Cout, Hout, Wout) float32
    """
    N, Cin, H, W = x_nchw.shape
    Cout, Cin_w, KH, KW = weight.shape
    assert Cin_w == Cin and KH == kernel_size and KW == kernel_size
    pad = kernel_size // 2
    s = int(upsample) if upsample else 1
    Hu, Wu = H * s, W * s
    assert Hu > pad and Wu > pad, "reflection pad needs upsampled dims > pad"
    Hp, Wp = Hu + 2 * pad, Wu + 2 * pad
    Hout = (Hp - KH) // stride + 1
    Wout = (Wp - KW) // stride + 1

    # Static source-index maps: padded-upsampled coordinate -> original coord.
    def _src(idx, up_size):
        j = idx - pad
        if j < 0:
            j = -j                               # ReflectionPad2d (no edge repeat)
        if j > up_size - 1:
            j = 2 * (up_size - 1) - j
        return j // s                            # nearest-neighbor upsample

    rmap = tuple(_src(i, Hu) for i in range(Hp))
    cmap = tuple(_src(j, Wu) for j in range(Wp))

    # Constant 0/1 selector folding column upsample + reflect pad + kw tap + stride.
    ccat_np = np.zeros((W, KW * Wout), np.float32)
    for kw in range(KW):
        for ow in range(Wout):
            ccat_np[cmap[ow * stride + kw], kw * Wout + ow] = 1.0
    ccat = jnp.asarray(ccat_np, dtype=jnp.bfloat16)      # 0/1 exact in bf16

    # Weights -> (Cout, KH*KW*Cin), columns ordered (kh, kw, ci); bf16 MXU operands.
    w2 = (jnp.transpose(weight, (0, 2, 3, 1))
          .reshape(Cout, KH * KW * Cin).astype(jnp.bfloat16))
    b2 = bias.reshape(Cout, 1).astype(jnp.float32)
    # Free (contiguous) view of the input; bf16 halves the HBM read bytes.
    x2 = x_nchw.reshape(N, Cin * H, W).astype(jnp.bfloat16)

    kernel = functools.partial(
        _upsample_conv_kernel, Cin=Cin, H=H, KH=KH, KW=KW,
        Hout=Hout, Wout=Wout, stride=stride, rmap=rmap)

    # NOTE: whole-image-per-grid-step blocks are tiny here (a few KB of VMEM).
    # For realistic image sizes add a second grid axis over output-row tiles
    # (KH-1 halo folded into rmap) so double-buffered blocks stay inside v7x's
    # 64 MiB VMEM and both TensorCores get work when N is small/odd.
    out_flat = pl.pallas_call(
        kernel,
        out_shape=jax.ShapeDtypeStruct((N, Cout, Hout * Wout), jnp.float32),
        grid=(N,),
        in_specs=[
            pl.BlockSpec((1, Cin * H, W), lambda n: (n, 0, 0)),
            pl.BlockSpec((W, KW * Wout), lambda n: (0, 0)),
            pl.BlockSpec((Cout, KH * KW * Cin), lambda n: (0, 0)),
            pl.BlockSpec((Cout, 1), lambda n: (0, 0)),
        ],
        out_specs=pl.BlockSpec((1, Cout, Hout * Wout), lambda n: (n, 0, 0)),
        compiler_params=pltpu.CompilerParams(dimension_semantics=("parallel",)),
    )(x2, ccat, w2, b2)

    # Free reshape (contiguous split of the last dim) back to NCHW.
    return out_flat.reshape(N, Cout, Hout, Wout)


def _reference(x, weight, bias, kernel_size, stride, upsample):
    """Plain-JAX reference on bf16-quantized inputs (matches kernel operands)."""
    pad = kernel_size // 2
    xq = x.astype(jnp.bfloat16).astype(jnp.float32)
    wq = weight.astype(jnp.bfloat16).astype(jnp.float32)
    if upsample:
        xq = jnp.repeat(jnp.repeat(xq, int(upsample), axis=2), int(upsample), axis=3)
    if pad > 0:
        xq = jnp.pad(xq, ((0, 0), (0, 0), (pad, pad), (pad, pad)), mode="reflect")
    out = lax.conv_general_dilated(
        xq, wq, window_strides=(stride, stride), padding="VALID",
        dimension_numbers=("NCHW", "OIHW", "NCHW"),
        precision=lax.Precision.HIGHEST)
    return out + bias[None, :, None, None]


if __name__ == "__main__":
    # module config (small, deterministic): matches the PyTorch layer
    in_size, out_size, kernel_size, stride, upsample = 4, 8, 3, 1, 2

    key = jax.random.PRNGKey(0)
    kx, kw, kb = jax.random.split(key, 3)

    x = jax.random.normal(kx, (2, in_size, 16, 16), dtype=jnp.float32)

    fan_in = in_size * kernel_size * kernel_size
    bound = 1.0 / float(np.sqrt(fan_in))
    weight = jax.random.uniform(
        kw, (out_size, in_size, kernel_size, kernel_size),
        minval=-bound, maxval=bound, dtype=jnp.float32)
    bias = jax.random.uniform(
        kb, (out_size,), minval=-bound, maxval=bound, dtype=jnp.float32)

    # main path: upsample=2, stride=1
    out = upsample_conv_layer(
        x, weight, bias, kernel_size=kernel_size, stride=stride, upsample=upsample)
    out = jax.block_until_ready(out)
    assert out.shape == (2, out_size, 32, 32), out.shape
    ref = _reference(x, weight, bias, kernel_size, stride, upsample)
    assert jnp.allclose(out, ref, atol=1e-3, rtol=1e-3), \
        float(jnp.max(jnp.abs(out - ref)))

    # secondary check: stride=2, no upsample (exercises the strided tap path)
    x_s = jax.random.normal(kx, (1, in_size, 16, 16), dtype=jnp.float32)
    out_s = upsample_conv_layer(
        x_s, weight, bias, kernel_size=kernel_size, stride=2, upsample=None)
    out_s = jax.block_until_ready(out_s)
    assert out_s.shape == (1, out_size, 8, 8), out_s.shape
    ref_s = _reference(x_s, weight, bias, kernel_size, 2, None)
    assert jnp.allclose(out_s, ref_s, atol=1e-3, rtol=1e-3), \
        float(jnp.max(jnp.abs(out_s - ref_s)))

    print("KERNEL_OK")
</pallas_src>

<mosaic_0001>
module attributes {stable_mosaic.version = 11 : i64} {
  func.func @_upsample_conv_kernel(%arg0: i32, %arg1: memref<1x64x16xbf16, #tpu.memory_space<vmem>>, %arg2: memref<16x96xbf16, #tpu.memory_space<vmem>>, %arg3: memref<8x36xbf16, #tpu.memory_space<vmem>>, %arg4: memref<8x1xf32, #tpu.memory_space<vmem>>, %arg5: memref<1x8x1024xf32, #tpu.memory_space<vmem>>) attributes {dimension_semantics = [#tpu.dimension_semantics<parallel>], iteration_bounds = array<i64: 2>, scalar_prefetch = 0 : i64, scratch_operands = 0 : i64, tpu.core_type = #tpu.core_type<tc>, window_params = [{transform_indices = @transform_0, window_bounds = array<i64: 1, 64, 16>}, {pipeline_mode = #tpu.pipeline_mode<synchronous>, transform_indices = @transform_1, window_bounds = array<i64: 16, 96>}, {pipeline_mode = #tpu.pipeline_mode<synchronous>, transform_indices = @transform_2, window_bounds = array<i64: 8, 36>}, {pipeline_mode = #tpu.pipeline_mode<synchronous>, transform_indices = @transform_3, window_bounds = array<i64: 8, 1>}, {transform_indices = @transform_4, window_bounds = array<i64: 1, 8, 1024>}]} {
    %c0 = arith.constant 0 : index
    %c0_0 = arith.constant 0 : index
    %c0_1 = arith.constant 0 : index
    %0 = vector.load %arg1[%c0, %c0_0, %c0_1] : memref<1x64x16xbf16, #tpu.memory_space<vmem>>, vector<1x64x16xbf16>
    %1 = vector.shape_cast %0 : vector<1x64x16xbf16> to vector<64x16xbf16>
    %c0_2 = arith.constant 0 : index
    %c0_3 = arith.constant 0 : index
    %2 = vector.load %arg2[%c0_2, %c0_3] : memref<16x96xbf16, #tpu.memory_space<vmem>>, vector<16x96xbf16>
    %cst = arith.constant dense<0.000000e+00> : vector<64x96xf32>
    %3 = tpu.matmul %1, %2, %cst {dimension_numbers = #tpu.dot_dimension_numbers<[1], [0], [0], [1], [0, 0, 1, 1], [], []>} : vector<64x16xbf16>, vector<16x96xbf16>, vector<64x96xf32> -> vector<64x96xf32>
    %4 = arith.truncf %3 : vector<64x96xf32> to vector<64x96xbf16>
    %5 = vector.extract_strided_slice %4 {offsets = [0, 0], sizes = [16, 32], strides = [1, 1]} : vector<64x96xbf16> to vector<16x32xbf16>
    %6 = vector.extract_strided_slice %4 {offsets = [16, 0], sizes = [16, 32], strides = [1, 1]} : vector<64x96xbf16> to vector<16x32xbf16>
    %7 = vector.extract_strided_slice %4 {offsets = [32, 0], sizes = [16, 32], strides = [1, 1]} : vector<64x96xbf16> to vector<16x32xbf16>
    %8 = vector.extract_strided_slice %4 {offsets = [48, 0], sizes = [16, 32], strides = [1, 1]} : vector<64x96xbf16> to vector<16x32xbf16>
    %9 = vector.extract_strided_slice %4 {offsets = [0, 32], sizes = [16, 32], strides = [1, 1]} : vector<64x96xbf16> to vector<16x32xbf16>
    %10 = vector.extract_strided_slice %4 {offsets = [16, 32], sizes = [16, 32], strides = [1, 1]} : vector<64x96xbf16> to vector<16x32xbf16>
    %11 = vector.extract_strided_slice %4 {offsets = [32, 32], sizes = [16, 32], strides = [1, 1]} : vector<64x96xbf16> to vector<16x32xbf16>
    %12 = vector.extract_strided_slice %4 {offsets = [48, 32], sizes = [16, 32], strides = [1, 1]} : vector<64x96xbf16> to vector<16x32xbf16>
    %13 = vector.extract_strided_slice %4 {offsets = [0, 64], sizes = [16, 32], strides = [1, 1]} : vector<64x96xbf16> to vector<16x32xbf16>
    %14 = vector.extract_strided_slice %4 {offsets = [16, 64], sizes = [16, 32], strides = [1, 1]} : vector<64x96xbf16> to vector<16x32xbf16>
    %15 = vector.extract_strided_slice %4 {offsets = [32, 64], sizes = [16, 32], strides = [1, 1]} : vector<64x96xbf16> to vector<16x32xbf16>
    %16 = vector.extract_strided_slice %4 {offsets = [48, 64], sizes = [16, 32], strides = [1, 1]} : vector<64x96xbf16> to vector<16x32xbf16>
    %17 = vector.shape_cast %5 : vector<16x32xbf16> to vector<1x16x32xbf16>
    %18 = vector.shape_cast %6 : vector<16x32xbf16> to vector<1x16x32xbf16>
    %19 = vector.shape_cast %7 : vector<16x32xbf16> to vector<1x16x32xbf16>
    %20 = vector.shape_cast %8 : vector<16x32xbf16> to vector<1x16x32xbf16>
    %21 = vector.shape_cast %9 : vector<16x32xbf16> to vector<1x16x32xbf16>
    %22 = vector.shape_cast %10 : vector<16x32xbf16> to vector<1x16x32xbf16>
    %23 = vector.shape_cast %11 : vector<16x32xbf16> to vector<1x16x32xbf16>
    %24 = vector.shape_cast %12 : vector<16x32xbf16> to vector<1x16x32xbf16>
    %25 = vector.shape_cast %13 : vector<16x32xbf16> to vector<1x16x32xbf16>
    %26 = vector.shape_cast %14 : vector<16x32xbf16> to vector<1x16x32xbf16>
    %27 = vector.shape_cast %15 : vector<16x32xbf16> to vector<1x16x32xbf16>
    %28 = vector.shape_cast %16 : vector<16x32xbf16> to vector<1x16x32xbf16>
    %29 = tpu.concatenate %17, %18, %19, %20, %21, %22, %23, %24, %25, %26, %27, %28 in 0 : vector<1x16x32xbf16>, vector<1x16x32xbf16>, vector<1x16x32xbf16>, vector<1x16x32xbf16>, vector<1x16x32xbf16>, vector<1x16x32xbf16>, vector<1x16x32xbf16>, vector<1x16x32xbf16>, vector<1x16x32xbf16>, vector<1x16x32xbf16>, vector<1x16x32xbf16>, vector<1x16x32xbf16> -> vector<12x16x32xbf16>
    %30 = vector.extract_strided_slice %29 {offsets = [0, 0, 0], sizes = [12, 1, 32], strides = [1, 1, 1]} : vector<12x16x32xbf16> to vector<12x1x32xbf16>
    %31 = vector.shape_cast %30 : vector<12x1x32xbf16> to vector<12x32xbf16>
    %32 = vector.extract_strided_slice %29 {offsets = [0, 1, 0], sizes = [12, 1, 32], strides = [1, 1, 1]} : vector<12x16x32xbf16> to vector<12x1x32xbf16>
    %33 = vector.shape_cast %32 : vector<12x1x32xbf16> to vector<12x32xbf16>
    %34 = vector.extract_strided_slice %29 {offsets = [0, 2, 0], sizes = [12, 1, 32], strides = [1, 1, 1]} : vector<12x16x32xbf16> to vector<12x1x32xbf16>
    %35 = vector.shape_cast %34 : vector<12x1x32xbf16> to vector<12x32xbf16>
    %36 = vector.extract_strided_slice %29 {offsets = [0, 3, 0], sizes = [12, 1, 32], strides = [1, 1, 1]} : vector<12x16x32xbf16> to vector<12x1x32xbf16>
    %37 = vector.shape_cast %36 : vector<12x1x32xbf16> to vector<12x32xbf16>
    %38 = vector.extract_strided_slice %29 {offsets = [0, 4, 0], sizes = [12, 1, 32], strides = [1, 1, 1]} : vector<12x16x32xbf16> to vector<12x1x32xbf16>
    %39 = vector.shape_cast %38 : vector<12x1x32xbf16> to vector<12x32xbf16>
    %40 = vector.extract_strided_slice %29 {offsets = [0, 5, 0], sizes = [12, 1, 32], strides = [1, 1, 1]} : vector<12x16x32xbf16> to vector<12x1x32xbf16>
    %41 = vector.shape_cast %40 : vector<12x1x32xbf16> to vector<12x32xbf16>
    %42 = vector.extract_strided_slice %29 {offsets = [0, 6, 0], sizes = [12, 1, 32], strides = [1, 1, 1]} : vector<12x16x32xbf16> to vector<12x1x32xbf16>
    %43 = vector.shape_cast %42 : vector<12x1x32xbf16> to vector<12x32xbf16>
    %44 = vector.extract_strided_slice %29 {offsets = [0, 7, 0], sizes = [12, 1, 32], strides = [1, 1, 1]} : vector<12x16x32xbf16> to vector<12x1x32xbf16>
    %45 = vector.shape_cast %44 : vector<12x1x32xbf16> to vector<12x32xbf16>
    %46 = vector.extract_strided_slice %29 {offsets = [0, 8, 0], sizes = [12, 1, 32], strides = [1, 1, 1]} : vector<12x16x32xbf16> to vector<12x1x32xbf16>
    %47 = vector.shape_cast %46 : vector<12x1x32xbf16> to vector<12x32xbf16>
    %48 = vector.extract_strided_slice %29 {offsets = [0, 9, 0], sizes = [12, 1, 32], strides = [1, 1, 1]} : vector<12x16x32xbf16> to vector<12x1x32xbf16>
    %49 = vector.shape_cast %48 : vector<12x1x32xbf16> to vector<12x32xbf16>
    %50 = vector.extract_strided_slice %29 {offsets = [0, 10, 0], sizes = [12, 1, 32], strides = [1, 1, 1]} : vector<12x16x32xbf16> to vector<12x1x32xbf16>
    %51 = vector.shape_cast %50 : vector<12x1x32xbf16> to vector<12x32xbf16>
    %52 = vector.extract_strided_slice %29 {offsets = [0, 11, 0], sizes = [12, 1, 32], strides = [1, 1, 1]} : vector<12x16x32xbf16> to vector<12x1x32xbf16>
    %53 = vector.shape_cast %52 : vector<12x1x32xbf16> to vector<12x32xbf16>
    %54 = vector.extract_strided_slice %29 {offsets = [0, 12, 0], sizes = [12, 1, 32], strides = [1, 1, 1]} : vector<12x16x32xbf16> to vector<12x1x32xbf16>
    %55 = vector.shape_cast %54 : vector<12x1x32xbf16> to vector<12x32xbf16>
    %56 = vector.extract_strided_slice %29 {offsets = [0, 13, 0], sizes = [12, 1, 32], strides = [1, 1, 1]} : vector<12x16x32xbf16> to vector<12x1x32xbf16>
    %57 = vector.shape_cast %56 : vector<12x1x32xbf16> to vector<12x32xbf16>
    %58 = vector.extract_strided_slice %29 {offsets = [0, 14, 0], sizes = [12, 1, 32], strides = [1, 1, 1]} : vector<12x16x32xbf16> to vector<12x1x32xbf16>
    %59 = vector.shape_cast %58 : vector<12x1x32xbf16> to vector<12x32xbf16>
    %60 = vector.extract_strided_slice %29 {offsets = [0, 15, 0], sizes = [12, 1, 32], strides = [1, 1, 1]} : vector<12x16x32xbf16> to vector<12x1x32xbf16>
    %61 = vector.shape_cast %60 : vector<12x1x32xbf16> to vector<12x32xbf16>
    %62 = tpu.concatenate %31, %31, %31, %33, %33, %35, %35, %37, %37, %39, %39, %41, %41, %43, %43, %45 in 1 : vector<12x32xbf16>, vector<12x32xbf16>, vector<12x32xbf16>, vector<12x32xbf16>, vector<12x32xbf16>, vector<12x32xbf16>, vector<12x32xbf16>, vector<12x32xbf16>, vector<12x32xbf16>, vector<12x32xbf16>, vector<12x32xbf16>, vector<12x32xbf16>, vector<12x32xbf16>, vector<12x32xbf16>, vector<12x32xbf16>, vector<12x32xbf16> -> vector<12x512xbf16>
    %63 = tpu.concatenate %45, %47, %47, %49, %49, %51, %51, %53, %53, %55, %55, %57, %57, %59, %59, %61 in 1 : vector<12x32xbf16>, vector<12x32xbf16>, vector<12x32xbf16>, vector<12x32xbf16>, vector<12x32xbf16>, vector<12x32xbf16>, vector<12x32xbf16>, vector<12x32xbf16>, vector<12x32xbf16>, vector<12x32xbf16>, vector<12x32xbf16>, vector<12x32xbf16>, vector<12x32xbf16>, vector<12x32xbf16>, vector<12x32xbf16>, vector<12x32xbf16> -> vector<12x512xbf16>
    %64 = tpu.concatenate %62, %63 in 1 : vector<12x512xbf16>, vector<12x512xbf16> -> vector<12x1024xbf16>
    %65 = tpu.concatenate %31, %31, %33, %33, %35, %35, %37, %37, %39, %39, %41, %41, %43, %43, %45, %45 in 1 : vector<12x32xbf16>, vector<12x32xbf16>, vector<12x32xbf16>, vector<12x32xbf16>, vector<12x32xbf16>, vector<12x32xbf16>, vector<12x32xbf16>, vector<12x32xbf16>, vector<12x32xbf16>, vector<12x32xbf16>, vector<12x32xbf16>, vector<12x32xbf16>, vector<12x32xbf16>, vector<12x32xbf16>, vector<12x32xbf16>, vector<12x32xbf16> -> vector<12x512xbf16>
    %66 = tpu.concatenate %47, %47, %49, %49, %51, %51, %53, %53, %55, %55, %57, %57, %59, %59, %61, %61 in 1 : vector<12x32xbf16>, vector<12x32xbf16>, vector<12x32xbf16>, vector<12x32xbf16>, vector<12x32xbf16>, vector<12x32xbf16>, vector<12x32xbf16>, vector<12x32xbf16>, vector<12x32xbf16>, vector<12x32xbf16>, vector<12x32xbf16>, vector<12x32xbf16>, vector<12x32xbf16>, vector<12x32xbf16>, vector<12x32xbf16>, vector<12x32xbf16> -> vector<12x512xbf16>
    %67 = tpu.concatenate %65, %66 in 1 : vector<12x512xbf16>, vector<12x512xbf16> -> vector<12x1024xbf16>
    %68 = tpu.concatenate %31, %33, %33, %35, %35, %37, %37, %39, %39, %41, %41, %43, %43, %45, %45, %47 in 1 : vector<12x32xbf16>, vector<12x32xbf16>, vector<12x32xbf16>, vector<12x32xbf16>, vector<12x32xbf16>, vector<12x32xbf16>, vector<12x32xbf16>, vector<12x32xbf16>, vector<12x32xbf16>, vector<12x32xbf16>, vector<12x32xbf16>, vector<12x32xbf16>, vector<12x32xbf16>, vector<12x32xbf16>, vector<12x32xbf16>, vector<12x32xbf16> -> vector<12x512xbf16>
    %69 = tpu.concatenate %47, %49, %49, %51, %51, %53, %53, %55, %55, %57, %57, %59, %59, %61, %61, %61 in 1 : vector<12x32xbf16>, vector<12x32xbf16>, vector<12x32xbf16>, vector<12x32xbf16>, vector<12x32xbf16>, vector<12x32xbf16>, vector<12x32xbf16>, vector<12x32xbf16>, vector<12x32xbf16>, vector<12x32xbf16>, vector<12x32xbf16>, vector<12x32xbf16>, vector<12x32xbf16>, vector<12x32xbf16>, vector<12x32xbf16>, vector<12x32xbf16> -> vector<12x512xbf16>
    %70 = tpu.concatenate %68, %69 in 1 : vector<12x512xbf16>, vector<12x512xbf16> -> vector<12x1024xbf16>
    %71 = tpu.concatenate %64, %67, %70 in 0 : vector<12x1024xbf16>, vector<12x1024xbf16>, vector<12x1024xbf16> -> vector<36x1024xbf16>
    %c0_4 = arith.constant 0 : index
    %c0_5 = arith.constant 0 : index
    %72 = vector.load %arg3[%c0_4, %c0_5] : memref<8x36xbf16, #tpu.memory_space<vmem>>, vector<8x36xbf16>
    %cst_6 = arith.constant dense<0.000000e+00> : vector<8x1024xf32>
    %73 = tpu.matmul %72, %71, %cst_6 {dimension_numbers = #tpu.dot_dimension_numbers<[1], [0], [0], [1], [0, 0, 1, 1], [], []>} : vector<8x36xbf16>, vector<36x1024xbf16>, vector<8x1024xf32> -> vector<8x1024xf32>
    %c0_7 = arith.constant 0 : index
    %c0_8 = arith.constant 0 : index
    %74 = vector.load %arg4[%c0_7, %c0_8] : memref<8x1xf32, #tpu.memory_space<vmem>>, vector<8x1xf32>
    %75 = vector.broadcast %74 : vector<8x1xf32> to vector<8x1024xf32>
    %76 = arith.addf %73, %75 : vector<8x1024xf32>
    %c0_9 = arith.constant 0 : index
    %c0_10 = arith.constant 0 : index
    %c0_11 = arith.constant 0 : index
    %77 = vector.load %arg5[%c0_9, %c0_10, %c0_11] : memref<1x8x1024xf32, #tpu.memory_space<vmem>>, vector<1x8x1024xf32>
    %78 = vector.shape_cast %77 : vector<1x8x1024xf32> to vector<8x1024xf32>
    %79 = vector.shape_cast %76 : vector<8x1024xf32> to vector<1x8x1024xf32>
    tpu.vector_store %arg5[%c0_9, %c0_10, %c0_11], %79 {strides = array<i32>} : memref<1x8x1024xf32, #tpu.memory_space<vmem>>, vector<1x8x1024xf32>,
    return
  }
  func.func @transform_0(%arg0: i32) -> (i32, i32, i32) {
    %c0_i32 = arith.constant 0 : i32
    %c0_i32_0 = arith.constant 0 : i32
    %c0_i32_1 = arith.constant 0 : i32
    return %arg0, %c0_i32, %c0_i32_0 : i32, i32, i32
  }
  func.func @transform_1(%arg0: i32) -> (i32, i32) {
    %c0_i32 = arith.constant 0 : i32
    %c0_i32_0 = arith.constant 0 : i32
    %c0_i32_1 = arith.constant 0 : i32
    return %c0_i32, %c0_i32_0 : i32, i32
  }
  func.func @transform_2(%arg0: i32) -> (i32, i32) {
    %c0_i32 = arith.constant 0 : i32
    %c0_i32_0 = arith.constant 0 : i32
    %c0_i32_1 = arith.constant 0 : i32
    return %c0_i32, %c0_i32_0 : i32, i32
  }
  func.func @transform_3(%arg0: i32) -> (i32, i32) {
    %c0_i32 = arith.constant 0 : i32
    %c0_i32_0 = arith.constant 0 : i32
    %c0_i32_1 = arith.constant 0 : i32
    return %c0_i32, %c0_i32_0 : i32, i32
  }
  func.func @transform_4(%arg0: i32) -> (i32, i32, i32) {
    %c0_i32 = arith.constant 0 : i32
    %c0_i32_0 = arith.constant 0 : i32
    %c0_i32_1 = arith.constant 0 : i32
    return %arg0, %c0_i32, %c0_i32_0 : i32, i32, i32
  }
}

</mosaic_0001>

<bundles_post_ra>
// kernel: tpu_custom_call.1
= control target key start
LH: loop header
LB: loop body
LE: loop exit
PB: predicated region body
PF: predicated region fallthrough
CT: control target
= control target key end

     0   :  { %9 = vsyncpa [#allocation3], 0  ;;  %s3418_s0 = inlined_call_operand.vmem [shape: bf16[2,64,16], index: 0, kind: input, shape index: {}]   ;;  %s3419_s1 = inlined_call_operand.vmem [shape: bf16[16,96], index: 1, kind: input, shape index: {}]   ;;  %s3420_s2 = inlined_call_operand.vmem [shape: bf16[8,36], index: 2, kind: input, shape index: {}]   ;;  %s3421_s3 = inlined_call_operand.vmem [shape: f32[8,1], index: 3, kind: input, shape index: {}]   ;;  %s3422_s4 = inlined_call_operand.hbm [shape: f32[2,8,1024], index: 4, kind: output, shape index: {}]  }
   0x1   :  { %11 = vsyncpa [#allocation3 + $0x1], 0  ;;  %s1852_s15 = smov 0   ;;  %s1854_s16 = smov 0  }
   0x2   :  { %s1856_s17 = smov 0   ;;  %s1858_s18 = smov 0  }
   0x3 LB: > { %s1873_s19 = sadd.s32 4294967295, %s1820_s18   ;;  %s1663_s20 = sadd.s32 4294967294, %s1820_s18   ;;  %s1820_s18 = sphi %s1858_s18, %s3544_s18   ;;  %s1816_s17 = sphi %s1856_s17, %s3543_s17   ;;  %s1812_s16 = sphi %s1854_s16, %s3542_s16   ;;  %s1808_s15 = sphi %s1852_s15, %s3541_s15  }
   0x4   : > { %s1877_s21 = sadd.s32 1, %s1820_s18   ;;  %s113_s22 = sadd.s32 1, %s1816_s17 }
   0x5   : > { %s110_s23 = ssub.s32 %s1820_s18, %s1877_s21  ;;  %p123_p0 = scmp.ne.s32.totalorder %s1816_s17, %s1812_s16 }
   0x6   : > { %p111_p1 = scmp.eq.s32.totalorder %s110_s23, 0  ;;  %p124_p2 = scmp.eq.s32.totalorder %s1873_s19, 1 }
   0x7   : > { %p129_p3 = scmp.ne.s32.totalorder %s1812_s16, %s1808_s15  ;;  %p130_p4 = scmp.eq.s32.totalorder %s1663_s20, 1 }
   0x8   : > { %s1888_s24 = scalar_select %p111_p1, %s1816_s17, %s113_s22  }
   0x9   : > { %p1890_p5 = por %p124_p2, %p123_p0  ;;  %p1894_p6 = por %p130_p4, %p129_p3 }
   0xa   : > { %p1666_p7 = scmp.ge.s32.totalorder %s1820_s18, 1  ;;  %p165_p8 = scmp.lt.s32.totalorder %s1820_s18, 3 }
   0xc   : > { %p166_p9 = pnand %p1666_p7, %p165_p8 }
   0xe   : > { %169 = sbr.rel (%p166_p9) target bundleno = 910 (0x38e), region = 36 }
  0x15   : > { %v1753_v0 = vld [vmem:[%s3419_s1] sm:$0xff]   ;;  %p191_p10 = scmp.lt.s32.totalorder %s1873_s19, 1  ;;  %vm233_vm0 = vcmask 130048   ;;  %s1822_s8 = smov 64   ;;  %vm348_vm1 = vcmask 1041409   ;;  %vm351_vm2 = vcmask 1042434  }
  0x16   : > { %1699 = vmatprep.subr.bf16.mxu0 %v1753_v0  ;;  %s1823_s9 = smov 96   ;;  %vm354_vm3 = vcmask 1043459   ;;  %vm357_vm4 = vcmask 1044484   ;;  %vm360_vm5 = vcmask 1045509   ;;  %vm363_vm6 = vcmask 1046534   ;;  %s1824_s10 = smov 32  }
  0x17   : > { %s192_s29 = scalar_select %p191_p10, %s1873_s19, 1  ;;  %1700 = vmatpush3.bf16.msra.mxu0 %v1753_v0  ;;  %vm366_vm7 = vcmask 1047559   ;;  %vm554_vm8 = vcmask 523264   ;;  %vm550_vm9 = vcmask 261120   ;;  %vm557_vm10 = vcmask 785408  }
  0x18   : > { %vm1335_vm11 = vcmask 1045504   ;;  %vm1175_vm12 = vcmask 1043456   ;;  %vm1400_vm13 = vcmask 1041408   ;;  %vm1396_vm14 = vcmask 293888   ;;  %s188_s20 = sand.u32 1, %s1812_s16   ;;  %s1693_s27 = sshll.u32 %s1873_s19, 10 }
  0x19   : > { %s1692_s30 = sshll.u32 %s192_s29, 5  ;;  %vm880_vm15 = vsmask.f32 4352  ;;  %s1667_s22 = sshll.u32 %s188_s20, 6 }
  0x1a   : > { %s195_s7 = scalar_lea.vmem %s3418_s0, %s1692_s30  ;;  %s190_s23 = scalar_lea.vmem [#allocation2], %s1667_s22 }
  0x1b   : > { %v1754_v1 = vld [vmem:[%s195_s7] sm:$0xff]   ;;  %v1755_v2 = vld [vmem:[%s195_s7 + $0x8] sm:$0xff]   ;;  %v1756_v3 = vld [vmem:[%s195_s7 + $0x10] sm:$0xff]   ;;  %s1604_s28 = sshll.u32 %s190_s23, 4  ;;  %s3374_s5 = scalar_lea.hbm %s3422_s4, %s1693_s27  ;;  %s3376_s28 = int_to_ptr.vmem [resolvable:$true] %s1604_s28 }
  0x1c   : > { %1701 = vmatprep.mubr.msk.bf16.mxu0 %vm233_vm0, %v1754_v1  ;;  %v1757_v4 = vld [vmem:[%s195_s7 + $0x18] sm:$0xff]   ;;  %s1590_s19 = scalar_lea.sflag [#allocation3], %s188_s20  ;;  %s1758_s6 = scalar_lea.vmem %s3376_s28, 1024 }
  0x1d   : > { %1702 = vmatmul.mubr.msk.bf16.vlgmr.msra.gmra.mrb[0].mxu0 %vm233_vm0, %v1755_v2  ;;  %p1759_p11 = scmp.ne.s32.totalorder %s3376_s28, %s1758_s6  ;;  %s1826_s7 = smov [#allocation2]  }
  0x1e   : > { %1705 = vmatprep.mubr.msk.bf16.mxu0 %vm233_vm0, %v1756_v3 }
  0x1f   : > { %p1760_p12 = pnand %p1759_p11, %p1890_p5 }
  0x21   : > { %p1761_p13 = pneg %p1760_p12 }
  0x25   : > { %1706 = vmatmul.mubr.msk.bf16.gmra.mrb[4].mxu0 %vm233_vm0, %v1757_v4 }
  0xf0   : > { %v1703_v5 = vpop.f32.mrb[0].mxu0 }
  0xf1   : > { %v280_v6 = vpop.f32.mrb[1].mxu0 }
  0xf2   : > { %v1704_v7 = vpop.f32.mrb[2].mxu0 }
  0xf3   : > { %v312_v8 = vpack.c.bf16 %v1704_v7, %v1703_v5  ;;  %v283_v9 = vpop.f32.mrb[3].mxu0 }
  0xf4   : > { %v311_v10 = vpack.c.bf16 %v283_v9, %v280_v6 }
  0xf5   : > { %v1908_v11 = vunpack.c.l.b16 %v312_v8  ;;  %v1910_v12 = vunpack.c.h.b16 %v312_v8  ;;  %329 = vrot.lane.b32.xlu1 %v312_v8, %s1822_s8  ;;  %319 = vrot.lane.b32.xlu0 %v312_v8, %s1823_s9 }
  0xf6   : > { %v1914_v13 = vunpack.c.l.b16 %v311_v10  ;;  %v1916_v14 = vunpack.c.h.b16 %v311_v10 }
  0xf7   : > { %v744_v15 = vrot.slane %v1910_v12, 5  ;;  %v501_v16 = vrot.slane %v1908_v11, 5  ;;  %v403_v17 = vrot.slane %v1908_v11, 1  ;;  %v451_v24 = vrot.slane %v1908_v11, 3 }
  0xf8   : > { %3474 = vst [vmem:[#allocation5_spill] sm:$0xff] %v1914_v13  ;;  %v1707_v18 = vpop.f32.mrb[4].mxu0  ;;  %v3430_v19 = vrot.slane %v1916_v14, 6  ;;  %v500_v20 = vrot.slane %v1914_v13, 6  ;;  %v402_v21 = vrot.slane %v1914_v13, 2  ;;  %v450_v22 = vrot.slane %v1914_v13, 4 }
  0xf9   : > { %327 = vrot.lane.b32.xlu1 %v311_v10, %s1822_s8  ;;  %316 = vrot.lane.b32.xlu0 %v311_v10, %s1823_s9  ;;  %v296_v23 = vpop.f32.mrb[5].mxu0  ;;  %v347_v25 = vrot.slane %v1908_v11, 7  ;;  %v526_v26 = vrot.slane %v1914_v13, 7  ;;  %v527_v27 = vrot.slane %v1908_v11, 6  ;;  %v427_v32 = vrot.slane %v1914_v13, 3 }
  0xfa   : > { %v1708_v28 = vpop.f32.mrb[6].mxu0  ;;  %v1075_v29 = vsel %vm348_vm1, %v744_v15, %v3430_v19  ;;  %v502_v30 = vsel %vm348_vm1, %v501_v16, %v500_v20  ;;  %v404_v31 = vsel %vm348_vm1, %v403_v17, %v402_v21  ;;  %v452_v35 = vsel %vm348_vm1, %v451_v24, %v450_v22 }
  0xfb   : > { %v314_v33 = vpack.c.bf16 %v1708_v28, %v1707_v18  ;;  %v299_v34 = vpop.f32.mrb[7].mxu0  ;;  %v349_v36 = vsel %vm348_vm1, %v347_v25, %v1914_v13  ;;  %v528_v37 = vsel %vm348_vm1, %v527_v27, %v526_v26  ;;  %v428_v39 = vrot.slane %v1908_v11, 2 }
  0xfc   : > { %v313_v38 = vpack.c.bf16 %v299_v34, %v296_v23  ;;  %v476_v40 = vrot.slane %v1914_v13, 5  ;;  %v477_v41 = vrot.slane %v1908_v11, 4  ;;  %v379_v44 = vrot.slane %v1914_v13, 1 }
  0xfd   : > { %v1946_v42 = vunpack.c.l.b16 %v314_v33  ;;  %v1948_v43 = vunpack.c.h.b16 %v314_v33  ;;  %333 = vrot.lane.b32.xlu1 %v314_v33, %s1822_s8  ;;  %325 = vrot.lane.b32.xlu0 %v314_v33, %s1823_s9  ;;  %v799_v45 = vrot.slane %v1910_v12, 7  ;;  %v429_v48 = vsel %vm348_vm1, %v428_v39, %v427_v32 }
  0xfe   : > { %v1954_v46 = vunpack.c.l.b16 %v313_v38  ;;  %v1956_v47 = vunpack.c.h.b16 %v313_v38  ;;  %v478_v49 = vsel %vm348_vm1, %v477_v41, %v476_v40  ;;  %v380_v17 = vsel %vm348_vm1, %v1908_v11, %v379_v44 }
  0xff   : > { %v747_v50 = vrot.slane %v1948_v43, 3  ;;  %v505_v51 = vrot.slane %v1946_v42, 3  ;;  %v406_v52 = vrot.slane %v1946_v42, 7  ;;  %v455_v53 = vrot.slane %v1946_v42, 1 }
 0x100   : > { %v745_v54 = vrot.slane %v1956_v47, 4  ;;  %v503_v55 = vrot.slane %v1954_v46, 4  ;;  %v405_v56 = vsel %vm351_vm2, %v1954_v46, %v404_v31  ;;  %v453_v57 = vrot.slane %v1954_v46, 2 }
 0x101   : > { %331 = vrot.lane.b32.xlu1 %v313_v38, %s1822_s8  ;;  %322 = vrot.lane.b32.xlu0 %v313_v38, %s1823_s9  ;;  %v1972_v58 = vsel %vm354_vm3, %v406_v52, %v405_v56  ;;  %v350_v59 = vrot.slane %v1954_v46, 6  ;;  %v353_v60 = vrot.slane %v1946_v42, 5  ;;  %v529_v61 = vrot.slane %v1954_v46, 5 }
 0x102   : > { %v1076_v62 = vsel %vm351_vm2, %v745_v54, %v1075_v29  ;;  %v746_v63 = vsel %vm348_vm1, %v745_v54, %v744_v15  ;;  %v504_v0 = vsel %vm351_vm2, %v503_v55, %v502_v30  ;;  %v454_v1 = vsel %vm351_vm2, %v453_v57, %v452_v35 }
 0x103   : > { %v1982_v2 = vsel %vm354_vm3, %v747_v50, %v1076_v62  ;;  %v1985_v3 = vsel %vm351_vm2, %v747_v50, %v746_v63  ;;  %v1988_v4 = vsel %vm354_vm3, %v505_v51, %v504_v0  ;;  %v1991_v5 = vsel %vm354_vm3, %v455_v53, %v454_v1 }
 0x104   : > { %v352_v6 = vsel %vm351_vm2, %v350_v59, %v349_v36  ;;  %v530_v7 = vsel %vm351_vm2, %v529_v61, %v528_v37  ;;  %v531_v8 = vrot.slane %v1946_v42, 4  ;;  %v430_v9 = vrot.slane %v1954_v46, 1 }
 0x105   : > { %v2002_v10 = vsel %vm354_vm3, %v353_v60, %v352_v6  ;;  %v479_v15 = vrot.slane %v1954_v46, 3  ;;  %v481_v16 = vrot.slane %v1946_v42, 2  ;;  %v381_v21 = vrot.slane %v1954_v46, 7 }
 0x106   : > { %v2009_v18 = vsel %vm354_vm3, %v531_v8, %v530_v7  ;;  %v431_v20 = vsel %vm351_vm2, %v430_v9, %v429_v48  ;;  %v383_v22 = vrot.slane %v1946_v42, 6  ;;  %v800_v26 = vrot.slane %v1956_v47, 6 }
 0x107   : > { %v2016_v23 = vsel %vm354_vm3, %v1946_v42, %v431_v20  ;;  %v480_v24 = vsel %vm351_vm2, %v479_v15, %v478_v49  ;;  %v802_v27 = vrot.slane %v1948_v43, 5  ;;  %v382_v29 = vsel %vm351_vm2, %v381_v21, %v380_v17 }
 0x108   : > { %v2022_v28 = vsel %vm354_vm3, %v481_v16, %v480_v24  ;;  %v967_v30 = vsel %vm348_vm1, %v799_v45, %v1916_v14  ;;  %v3423_v31 = vrot.slane %v1916_v14, 2  ;;  %v2031_v32 = vsel %vm354_vm3, %v383_v22, %v382_v29 }
 0x109   : > { %v968_v33 = vsel %vm351_vm2, %v800_v26, %v967_v30  ;;  %v634_v34 = vrot.slane %v1910_v12, 1  ;;  %v636_v35 = vrot.slane %v1948_v43, 7  ;;  %v3428_v37 = vrot.slane %v1916_v14, 3 }
 0x10a   : > { %v2037_v36 = vsel %vm354_vm3, %v802_v27, %v968_v33  ;;  %v659_v38 = vrot.slane %v1910_v12, 2  ;;  %v660_v39 = vrot.slane %v1956_v47, 1  ;;  %v3424_v41 = vrot.slane %v1916_v14, 4 }
 0x10b   : > { %v1003_v40 = vsel %vm348_vm1, %v634_v34, %v3423_v31  ;;  %v688_v44 = vrot.slane %v1910_v12, 3  ;;  %v689_v48 = vrot.slane %v1956_v47, 2  ;;  %v691_v51 = vrot.slane %v1948_v43, 1 }
 0x10c   : > { %v1004_v49 = vsel %vm351_vm2, %v1956_v47, %v1003_v40  ;;  %v1019_v50 = vsel %vm348_vm1, %v659_v38, %v3428_v37  ;;  %v3427_v52 = vrot.slane %v1916_v14, 7  ;;  %v770_v56 = vrot.slane %v1910_v12, 6 }
 0x10d   : > { %v2056_v53 = vsel %vm354_vm3, %v636_v35, %v1004_v49  ;;  %v1020_v54 = vsel %vm351_vm2, %v660_v39, %v1019_v50  ;;  %v1039_v55 = vsel %vm348_vm1, %v688_v44, %v3424_v41  ;;  %v771_v62 = vrot.slane %v1956_v47, 5 }
 0x10e   : > { %v2065_v57 = vsel %vm354_vm3, %v1948_v43, %v1020_v54  ;;  %v1040_v61 = vsel %vm351_vm2, %v689_v48, %v1039_v55  ;;  %v773_v63 = vrot.slane %v1948_v43, 4  ;;  %v1091_v1 = vsel %vm348_vm1, %v770_v56, %v3427_v52 }
 0x10f   : > { %v2071_v0 = vsel %vm354_vm3, %v691_v51, %v1040_v61  ;;  %v3426_v6 = vrot.slane %v1916_v14, 1  ;;  %v605_v7 = vrot.slane %v1956_v47, 7  ;;  %v1092_v8 = vsel %vm351_vm2, %v771_v62, %v1091_v1 }
 0x110   : > { %v607_v9 = vrot.slane %v1948_v43, 6  ;;  %v3425_v15 = vrot.slane %v1916_v14, 5  ;;  %v714_v16 = vrot.slane %v1910_v12, 4  ;;  %v2083_v17 = vsel %vm354_vm3, %v773_v63, %v1092_v8 }
 0x111   : > { %v983_v20 = vsel %vm348_vm1, %v1910_v12, %v3426_v6  ;;  %v715_v21 = vrot.slane %v1956_v47, 3  ;;  %v717_v22 = vrot.slane %v1948_v43, 2  ;;  %v661_v30 = vsel %vm348_vm1, %v660_v39, %v659_v38 }
 0x112   : > { %v984_v24 = vsel %vm351_vm2, %v605_v7, %v983_v20  ;;  %v1055_v29 = vsel %vm348_vm1, %v714_v16, %v3425_v15  ;;  %v772_v33 = vsel %vm348_vm1, %v771_v62, %v770_v56  ;;  %v2103_v50 = vsel %vm351_vm2, %v1948_v43, %v661_v30 }
 0x113   : > { %v2098_v40 = vsel %vm354_vm3, %v607_v9, %v984_v24  ;;  %v1056_v49 = vsel %vm351_vm2, %v715_v21, %v1055_v29  ;;  %v2106_v54 = vsel %vm351_vm2, %v773_v63, %v772_v33  ;;  %v606_v38 = vsel %vm348_vm1, %v605_v7, %v1910_v12 }
 0x114   : > { %v2109_v55 = vsel %vm354_vm3, %v717_v22, %v1056_v49  ;;  %v716_v39 = vsel %vm348_vm1, %v715_v21, %v714_v16  ;;  %v690_v56 = vsel %vm348_vm1, %v689_v48, %v688_v44  ;;  %v2116_v61 = vsel %vm351_vm2, %v607_v9, %v606_v38 }
 0x115   : > { %v2119_v62 = vsel %vm351_vm2, %v717_v22, %v716_v39  ;;  %v2122_v43 = vsel %vm351_vm2, %v691_v51, %v690_v56  ;;  %v801_v63 = vsel %vm348_vm1, %v800_v26, %v799_v45  ;;  %v635_v7 = vsel %vm348_vm1, %v1956_v47, %v634_v34 }
 0x116   : > { %v2128_v1 = vsel %vm351_vm2, %v802_v27, %v801_v63  ;;  %v581_v44 = vsel %vm348_vm1, %v350_v59, %v347_v25  ;;  %v2138_v48 = vsel %vm351_vm2, %v636_v35, %v635_v7 }
 0x117   : > { %v2143_v12 = vsel %vm351_vm2, %v353_v60, %v581_v44 }
 0x167   : > { %v330_v45 = vpop.permute.xlu1 %329  ;;  %v320_v26 = vpop.permute.xlu0 %319 }
 0x168   : > { %v2145_v27 = vunpack.c.l.b16 %v330_v45  ;;  %v2147_v51 = vunpack.c.h.b16 %v330_v45  ;;  %v2149_v47 = vunpack.c.l.b16 %v320_v26  ;;  %v2151_v11 = vunpack.c.h.b16 %v320_v26 }
 0x16a   : > { %v648_v25 = vrot.slane %v2147_v51, 1  ;;  %v751_v46 = vrot.slane %v2151_v11, 1  ;;  %v509_v42 = vrot.slane %v2149_v47, 1  ;;  %v515_v59 = vrot.slane %v2145_v27, 5 }
 0x16b   : > { %v328_v60 = vpop.permute.xlu1 %327  ;;  %v317_v34 = vpop.permute.xlu0 %316  ;;  %v417_v8 = vrot.slane %v2145_v27, 1 }
 0x16c   : > { %v2161_v20 = vunpack.c.l.b16 %v328_v60  ;;  %v2163_v21 = vunpack.c.h.b16 %v328_v60  ;;  %v2165_v22 = vunpack.c.l.b16 %v317_v34  ;;  %v2167_v24 = vunpack.c.h.b16 %v317_v34 }
 0x16e   : > { %3475 = vst [vmem:[#allocation6_spill] sm:$0xff] %v2161_v20  ;;  %v3429_v38 = vrot.slane %v2163_v21, 2  ;;  %v749_v39 = vrot.slane %v2167_v24, 2  ;;  %v756_v56 = vrot.slane %v2163_v21, 6  ;;  %v507_v63 = vrot.slane %v2165_v22, 2 }
 0x16f   : > { %v334_v7 = vpop.permute.xlu1 %333  ;;  %v326_v44 = vpop.permute.xlu0 %325  ;;  %v514_v45 = vrot.slane %v2161_v20, 6  ;;  %v408_v26 = vrot.slane %v2165_v22, 6  ;;  %v416_v60 = vrot.slane %v2161_v20, 2  ;;  %v457_v34 = vsel %vm357_vm4, %v2165_v22, %v1991_v5 }
 0x170   : > { %v2183_v31 = vunpack.c.l.b16 %v334_v7  ;;  %v2185_v41 = vunpack.c.h.b16 %v334_v7  ;;  %v2187_v15 = vunpack.c.l.b16 %v326_v44  ;;  %v2189_v6 = vunpack.c.h.b16 %v326_v44 }
 0x171   : > { %v1010_v52 = vsel %vm348_vm1, %v648_v25, %v3429_v38  ;;  %v1078_v37 = vsel %vm357_vm4, %v749_v39, %v1982_v2  ;;  %v750_v49 = vsel %vm354_vm3, %v749_v39, %v1985_v3  ;;  %v508_v5 = vsel %vm357_vm4, %v507_v63, %v1988_v4 }
 0x172   : > { %v650_v7 = vrot.slane %v2185_v41, 7  ;;  %v754_v33 = vrot.slane %v2189_v6, 7  ;;  %v1079_v44 = vsel %vm360_vm5, %v751_v46, %v1078_v37  ;;  %v752_v29 = vsel %vm357_vm4, %v751_v46, %v750_v49 }
 0x173   : > { %v332_v30 = vpop.permute.xlu1 %331  ;;  %v323_v16 = vpop.permute.xlu0 %322  ;;  %v510_v38 = vsel %vm360_vm5, %v509_v42, %v508_v5  ;;  %v512_v2 = vrot.slane %v2187_v15, 7  ;;  %v516_v9 = vsel %vm348_vm1, %v515_v59, %v514_v45  ;;  %v519_v3 = vrot.slane %v2183_v31, 3 }
 0x174   : > { %v2208_v39 = vunpack.c.l.b16 %v332_v30  ;;  %v2210_v4 = vunpack.c.h.b16 %v332_v30  ;;  %v2212_v63 = vunpack.c.l.b16 %v323_v16  ;;  %v2214_v35 = vunpack.c.h.b16 %v323_v16 }
 0x175   : > { %v409_v37 = vsel %vm357_vm4, %v408_v26, %v1972_v58  ;;  %v414_v46 = vrot.slane %v2187_v15, 3  ;;  %v418_v42 = vsel %vm348_vm1, %v417_v8, %v416_v60  ;;  %v420_v49 = vrot.slane %v2183_v31, 7 }
 0x176   : > { %v1011_v59 = vsel %vm351_vm2, %v2210_v4, %v1010_v52  ;;  %v1080_v30 = vsel %vm363_vm6, %v2214_v35, %v1079_v44  ;;  %v649_v45 = vsel %vm348_vm1, %v2210_v4, %v648_v25  ;;  %v753_v16 = vsel %vm360_vm5, %v2214_v35, %v752_v29 }
 0x177   : > { %v1012_v58 = vsel %vm354_vm3, %v650_v7, %v1011_v59  ;;  %v1081_v26 = vsel %vm366_vm7, %v754_v33, %v1080_v30  ;;  %v651_v8 = vsel %vm351_vm2, %v650_v7, %v649_v45  ;;  %v755_v60 = vsel %vm363_vm6, %v754_v33, %v753_v16 }
 0x178   : > { %v2233_v5 = vpack.c.b16 %v1012_v58, %v1012_v58  ;;  %v2235_v52 = vpack.c.b16 %v1081_v26, %v1081_v26  ;;  %v2237_v19 = vpack.c.b16 %v651_v8, %v651_v8  ;;  %v757_v25 = vsel %vm366_vm7, %v756_v56, %v755_v60 }
 0x179   : > { %v3476_v29 = vrot.slane %v1916_v14, 6  ;;  %v511_v59 = vsel %vm363_vm6, %v2212_v63, %v510_v38  ;;  %v517_v7 = vrot.slane %v2208_v39, 4  ;;  %v3478_v33 = vrot.slane %v2149_v47, 5 }
 0x17a   : > { %1017 = vrot.lane.b32.xlu1 %v2233_v5, %s1824_s10  ;;  %1087 = vrot.lane.b32.xlu0 %v2235_v52, %s1824_s10  ;;  %v513_v45 = vsel %vm366_vm7, %v512_v2, %v511_v59  ;;  %v412_v16 = vrot.slane %v2212_v63, 4  ;;  %v419_v38 = vsel %vm351_vm2, %v2208_v39, %v418_v42  ;;  %v3479_v58 = vrot.slane %v2149_v47, 7 }
 0x17b   : > { %v2244_v44 = vpack.c.b16 %v757_v25, %v3476_v29  ;;  %v411_v30 = vsel %vm360_vm5, %v3478_v33, %v409_v37  ;;  %v518_v37 = vsel %vm351_vm2, %v517_v7, %v516_v9  ;;  %v421_v8 = vsel %vm354_vm3, %v420_v49, %v419_v38 }
 0x17c   : > { %v459_v26 = vsel %vm360_vm5, %v3479_v58, %v457_v34  ;;  %v460_v60 = vrot.slane %v2212_v63, 6  ;;  %v462_v25 = vrot.slane %v2187_v15, 5  ;;  %v520_v29 = vsel %vm354_vm3, %v519_v3, %v518_v37 }
 0x17d   : > { %3477 = vst [vmem:[#allocation7_spill] sm:$0xff] %v2244_v44  ;;  %v413_v2 = vsel %vm363_vm6, %v412_v16, %v411_v30  ;;  %v464_v59 = vrot.slane %v2161_v20, 4  ;;  %v467_v42 = vrot.slane %v2208_v39, 2  ;;  %v2271_v33 = vpack.c.b16 %v520_v29, %v513_v45 }
 0x17e   : > { %v415_v34 = vsel %vm366_vm7, %v414_v46, %v413_v2  ;;  %v461_v9 = vsel %vm363_vm6, %v460_v60, %v459_v26  ;;  %v469_v49 = vrot.slane %v2183_v31, 1  ;;  %656 = vrot.lane.b32.xlu1 %v2237_v19, %s1823_s9  ;;  %765 = vrot.lane.b32.xlu0 %v2244_v44, %s1823_s9  ;;  %v3480_v30 = vrot.slane %v2145_v27, 3 }
 0x17f   : > { %v2280_v3 = vpack.c.b16 %v421_v8, %v415_v34  ;;  %v463_v7 = vsel %vm366_vm7, %v462_v25, %v461_v9  ;;  %v3433_v46 = vrot.slane %v2165_v22, 4  ;;  %v3431_v38 = vrot.slane %v2212_v63, 2 }
 0x180   : > { %v466_v45 = vsel %vm348_vm1, %v3480_v30, %v464_v59  ;;  %v3432_v58 = vrot.slane %v2187_v15, 1  ;;  %v3481_v26 = vrot.slane %v2145_v27, 7  ;;  %v3436_v25 = vrot.slane %v2208_v39, 6 }
 0x181   : > { %v468_v16 = vsel %vm351_vm2, %v467_v42, %v466_v45  ;;  %v358_v60 = vsel %vm357_vm4, %v3433_v46, %v2002_v10  ;;  %v3435_v29 = vrot.slane %v2183_v31, 5  ;;  %v3482_v59 = vrot.slane %v2149_v47, 3 }
 0x182   : > { %v369_v37 = vsel %vm348_vm1, %v3481_v26, %v2161_v20  ;;  %v470_v8 = vsel %vm354_vm3, %v469_v49, %v468_v16  ;;  %v533_v34 = vrot.slane %v2165_v22, 3  ;;  %v537_v9 = vrot.slane %v2212_v63, 1  ;;  %522 = vrot.lane.b32.xlu1 %v2271_v33, %s1824_s10  ;;  %423 = vrot.lane.b32.xlu0 %v2280_v3, %s1824_s10 }
 0x183   : > { %v2301_v2 = vpack.c.b16 %v470_v8, %v463_v7  ;;  %v361_v42 = vsel %vm360_vm5, %v3482_v59, %v358_v60  ;;  %v371_v49 = vsel %vm351_vm2, %v3436_v25, %v369_v37  ;;  %v540_v7 = vrot.slane %v2161_v20, 7 }
 0x184   : > { %v364_v10 = vsel %vm363_vm6, %v3431_v38, %v361_v42  ;;  %v543_v30 = vrot.slane %v2208_v39, 5  ;;  %v373_v16 = vsel %vm354_vm3, %v3435_v29, %v371_v49  ;;  %v534_v26 = vsel %vm357_vm4, %v533_v34, %v2009_v18 }
 0x185   : > { %v367_v45 = vsel %vm366_vm7, %v3432_v58, %v364_v10  ;;  %v545_v8 = vrot.slane %v2183_v31, 4  ;;  %v3483_v37 = vrot.slane %v2149_v47, 2  ;;  %v3484_v42 = vrot.slane %v2145_v27, 6 }
 0x186   : > { %v2329_v60 = vpack.c.b16 %v373_v16, %v367_v45  ;;  %v433_v10 = vrot.slane %v2165_v22, 7  ;;  %v435_v18 = vrot.slane %v2149_v47, 6  ;;  %v437_v34 = vrot.slane %v2212_v63, 5  ;;  %472 = vrot.lane.b32.xlu1 %v2301_v2, %s1824_s10 }
 0x187   : > { %v536_v59 = vsel %vm360_vm5, %v3483_v37, %v534_v26  ;;  %v542_v38 = vsel %vm348_vm1, %v3484_v42, %v540_v7  ;;  %v441_v26 = vrot.slane %v2161_v20, 3  ;;  %v442_v37 = vrot.slane %v2145_v27, 2 }
 0x188   : > { %v538_v58 = vsel %vm363_vm6, %v537_v9, %v536_v59  ;;  %v544_v49 = vsel %vm351_vm2, %v543_v30, %v542_v38  ;;  %375 = vrot.lane.b32.xlu0 %v2329_v60, %s1824_s10  ;;  %v434_v9 = vsel %vm357_vm4, %v433_v10, %v2016_v23  ;;  %v439_v38 = vrot.slane %v2187_v15, 4 }
 0x189   : > { %v539_v45 = vsel %vm366_vm7, %v2187_v15, %v538_v58  ;;  %v546_v7 = vsel %vm354_vm3, %v545_v8, %v544_v49  ;;  %v436_v16 = vsel %vm360_vm5, %v435_v18, %v434_v9  ;;  %v444_v42 = vrot.slane %v2208_v39, 1 }
 0x18a   : > { %v2352_v30 = vpack.c.b16 %v546_v7, %v539_v45  ;;  %v438_v59 = vsel %vm363_vm6, %v437_v34, %v436_v16  ;;  %v483_v58 = vrot.slane %v2165_v22, 1  ;;  %v486_v8 = vrot.slane %v2212_v63, 7 }
 0x18b   : > { %v440_v23 = vsel %vm366_vm7, %v439_v38, %v438_v59  ;;  %v443_v10 = vsel %vm348_vm1, %v442_v37, %v441_v26  ;;  %v488_v49 = vrot.slane %v2187_v15, 6  ;;  %v490_v18 = vrot.slane %v2161_v20, 5 }
 0x18c   : > { %947 = vrot.lane.b32.xlu1 %v2352_v30, %s1822_s8  ;;  %v445_v45 = vsel %vm351_vm2, %v444_v42, %v443_v10  ;;  %v484_v34 = vsel %vm357_vm4, %v483_v58, %v2022_v28  ;;  %v491_v7 = vrot.slane %v2145_v27, 4  ;;  %v493_v9 = vrot.slane %v2208_v39, 3 }
 0x18d   : > { %v446_v38 = vsel %vm354_vm3, %v2183_v31, %v445_v45  ;;  %v485_v16 = vsel %vm360_vm5, %v2149_v47, %v484_v34  ;;  %v495_v26 = vrot.slane %v2183_v31, 2  ;;  %v385_v37 = vrot.slane %v2165_v22, 5 }
 0x18e   : > { %v2378_v59 = vpack.c.b16 %v446_v38, %v440_v23  ;;  %v487_v42 = vsel %vm363_vm6, %v486_v8, %v485_v16  ;;  %v492_v28 = vsel %vm348_vm1, %v491_v7, %v490_v18  ;;  %v387_v58 = vrot.slane %v2149_v47, 4 }
 0x18f   : > { %v489_v10 = vsel %vm366_vm7, %v488_v49, %v487_v42  ;;  %v494_v46 = vsel %vm351_vm2, %v493_v9, %v492_v28  ;;  %v386_v45 = vsel %vm357_vm4, %v385_v37, %v2031_v32  ;;  %v389_v34 = vrot.slane %v2212_v63, 3 }
 0x190   : > { %943 = vrot.lane.b32.xlu0 %v2378_v59, %s1822_s8  ;;  %548 = vrot.lane.b32.xlu1 %v2352_v30, %s1823_s9  ;;  %v496_v8 = vsel %vm354_vm3, %v495_v26, %v494_v46  ;;  %v388_v23 = vsel %vm360_vm5, %v387_v58, %v386_v45  ;;  %v393_v18 = vrot.slane %v2161_v20, 1  ;;  %v391_v7 = vrot.slane %v2187_v15, 2 }
 0x191   : > { %v390_v49 = vsel %vm363_vm6, %v389_v34, %v388_v23  ;;  %v395_v32 = vrot.slane %v2208_v39, 7  ;;  %v2398_v9 = vpack.c.b16 %v496_v8, %v489_v10  ;;  %v397_v16 = vrot.slane %v2183_v31, 6 }
 0x192   : > { %v394_v38 = vsel %vm348_vm1, %v2145_v27, %v393_v18  ;;  %v392_v37 = vsel %vm366_vm7, %v391_v7, %v390_v49  ;;  %v3441_v28 = vrot.slane %v2167_v24, 4  ;;  %v3437_v58 = vrot.slane %v2214_v35, 2 }
 0x193   : > { %v396_v46 = vsel %vm351_vm2, %v395_v32, %v394_v38  ;;  %v3438_v45 = vrot.slane %v2151_v11, 3  ;;  %v3462_v34 = vrot.slane %v2167_v24, 7  ;;  %v3450_v8 = vrot.slane %v2214_v35, 5 }
 0x194   : > { %448 = vrot.lane.b32.xlu0 %v2378_v59, %s1823_s9  ;;  %945 = vrot.lane.b32.xlu1 %v2398_v9, %s1822_s8  ;;  %v398_v26 = vsel %vm354_vm3, %v397_v16, %v396_v46  ;;  %v970_v10 = vsel %vm357_vm4, %v3441_v28, %v2037_v36  ;;  %v3445_v23 = vrot.slane %v2189_v6, 1  ;;  %v3434_v18 = vrot.slane %v2147_v51, 7 }
 0x195   : > { %v2410_v42 = vpack.c.b16 %v398_v26, %v392_v37  ;;  %v3439_v49 = vrot.slane %v2210_v4, 6  ;;  %v3456_v36 = vrot.slane %v2151_v11, 6  ;;  %v971_v7 = vsel %vm360_vm5, %v3438_v45, %v970_v10 }
 0x196   : > { %v1022_v32 = vsel %vm357_vm4, %v3462_v34, %v2065_v57  ;;  %v3442_v38 = vrot.slane %v2151_v11, 7  ;;  %v3440_v16 = vrot.slane %v2214_v35, 6  ;;  %v972_v37 = vsel %vm363_vm6, %v3437_v58, %v971_v7 }
 0x197   : > { %v974_v46 = vsel %vm348_vm1, %v3434_v18, %v2163_v21  ;;  %v1023_v26 = vsel %vm360_vm5, %v3456_v36, %v1022_v32  ;;  %v1042_v57 = vsel %vm357_vm4, %v2167_v24, %v2071_v0  ;;  %v3447_v32 = vrot.slane %v2147_v51, 4 }
 0x198   : > { %941 = vrot.lane.b32.xlu0 %v2410_v42, %s1822_s8  ;;  %425 = vrot.lane.b32.xlu1 %v2280_v3, %s1822_s8  ;;  %v2462_v10 = vsel %vm363_vm6, %v3450_v8, %v1023_v26  ;;  %v1043_v7 = vsel %vm360_vm5, %v3442_v38, %v1042_v57  ;;  %v3444_v18 = vrot.slane %v2210_v4, 3  ;;  %v975_v0 = vsel %vm351_vm2, %v3439_v49, %v974_v46 }
 0x199   : > { %v2475_v29 = vsel %vm363_vm6, %v3440_v16, %v1043_v7  ;;  %v3443_v26 = vrot.slane %v2185_v41, 2  ;;  %v3455_v25 = vrot.slane %v2167_v24, 3  ;;  %v3446_v58 = vrot.slane %v2185_v41, 5 }
 0x19a   : > { %v3451_v57 = vrot.slane %v2210_v4, 1  ;;  %v730_v45 = vsel %vm348_vm1, %v3444_v18, %v3447_v32  ;;  %v3449_v46 = vrot.slane %v2151_v11, 2  ;;  %v3452_v49 = vrot.slane %v2147_v51, 2 }
 0x19b   : > { %v2491_v7 = vsel %vm351_vm2, %v3443_v26, %v730_v45  ;;  %v3448_v16 = vrot.slane %v2214_v35, 1  ;;  %v1094_v28 = vsel %vm357_vm4, %v3455_v25, %v2083_v17  ;;  %v2505_v38 = vsel %vm366_vm7, %v3445_v23, %v972_v37 }
 0x19c   : > { %400 = vrot.lane.b32.xlu0 %v2410_v42, %s1823_s9  ;;  %524 = vrot.lane.b32.xlu1 %v2271_v33, %s1822_s8  ;;  %v2510_v45 = vsel %vm354_vm3, %v3446_v58, %v975_v0  ;;  %v1095_v17 = vsel %vm360_vm5, %v3449_v46, %v1094_v28  ;;  %v3454_v26 = vrot.slane %v2167_v24, 5  ;;  %v3459_v18 = vrot.slane %v2210_v4, 5 }
 0x19d   : > { %v3453_v37 = vrot.slane %v2151_v11, 4  ;;  %v3457_v23 = vrot.slane %v2214_v35, 3  ;;  %v675_v0 = vsel %vm348_vm1, %v3451_v57, %v3452_v49  ;;  %v702_v58 = vrot.slane %v2147_v51, 3 }
 0x19e   : > { %v986_v28 = vsel %vm357_vm4, %v3454_v26, %v2098_v40  ;;  %v3458_v46 = vrot.slane %v2167_v24, 1  ;;  %v3461_v8 = vrot.slane %v2214_v35, 7  ;;  %v3464_v40 = vrot.slane %v2167_v24, 6 }
 0x19f   : > { %v987_v32 = vsel %vm360_vm5, %v3453_v37, %v986_v28  ;;  %v3460_v49 = vrot.slane %v2147_v51, 6  ;;  %v1202_v25 = vpack.c.b16 %v2510_v45, %v2505_v38  ;;  %v676_v36 = vsel %vm351_vm2, %v2185_v41, %v675_v0 }
 0x1a0   : > { %498 = vrot.lane.b32.xlu0 %v2398_v9, %s1823_s9  ;;  %474 = vrot.lane.b32.xlu1 %v2301_v2, %s1822_s8  ;;  %v2549_v57 = vsel %vm363_vm6, %v3457_v23, %v987_v32  ;;  %v1058_v26 = vsel %vm357_vm4, %v3458_v46, %v2109_v55  ;;  %v758_v46 = vrot.slane %v2147_v51, 5  ;;  %v759_v0 = vrot.slane %v2210_v4, 4 }
 0x1a1   : > { %v1059_v23 = vsel %vm360_vm5, %v2151_v11, %v1058_v26  ;;  %v3468_v34 = vrot.slane %v2151_v11, 5  ;;  %v3485_v26 = vrot.slane %v2185_v41, 4  ;;  %v3506_v20 = vrot.slane %v2151_v11, 3 }
 0x1a2   : > { %v2575_v55 = vsel %vm363_vm6, %v3461_v8, %v1059_v23  ;;  %v3466_v23 = vrot.slane %v2163_v21, 4  ;;  %v2589_v8 = vpack.c.b16 %v676_v36, %v676_v36  ;;  %v1082_v32 = vsel %vm348_vm1, %v758_v46, %v756_v56 }
 0x1a3   : > { %v3467_v56 = vrot.slane %v2210_v4, 7 }
 0x1a4   : > { %377 = vrot.lane.b32.xlu0 %v2329_v60, %s1822_s8  ;;  %1200 = vrot.lane.b32.xlu1 %v2352_v30, %s1824_s10  ;;  %v2520_v30 = vsel %vm363_vm6, %v3448_v16, %v1095_v17  ;;  %v703_v17 = vrot.slane %v2210_v4, 2  ;;  %v705_v16 = vrot.slane %v2185_v41, 1  ;;  %v1046_v36 = vsel %vm348_vm1, %v702_v58, %v3466_v23 }
 0x1a6   : > { %v704_v28 = vsel %vm348_vm1, %v703_v17, %v702_v58 }
 0x1a7   : > { %v2554_v37 = vsel %vm351_vm2, %v705_v16, %v704_v28  ;;  %v786_v28 = vsel %vm348_vm1, %v3459_v18, %v3460_v49  ;;  %v1006_v18 = vsel %vm357_vm4, %v3464_v40, %v2056_v53  ;;  %v761_v49 = vrot.slane %v2185_v41, 3 }
 0x1a8   : > { %1192 = vrot.lane.b32.xlu0 %v2378_v59, %s1824_s10  ;;  %1196 = vrot.lane.b32.xlu1 %v2398_v9, %s1824_s10  ;;  %v788_v44 = vsel %vm351_vm2, %v3485_v26, %v786_v28  ;;  %v1083_v53 = vsel %vm351_vm2, %v759_v0, %v1082_v32  ;;  %v1007_v13 = vsel %vm360_vm5, %v3468_v34, %v1006_v18  ;;  %v3486_v32 = vrot.slane %v2214_v35, 4 }
 0x1a9   : > { %v1047_v28 = vsel %vm351_vm2, %v703_v17, %v1046_v36  ;;  %v2624_v18 = vpack.c.b16 %v788_v44, %v788_v44  ;;  %v3487_v17 = vrot.slane %v2167_v24, 7 }
 0x1aa   : > { %v1008_v58 = vsel %vm363_vm6, %v3486_v32, %v1007_v13  ;;  %v3489_v13 = vrot.slane %v2167_v24, 3  ;;  %v3469_v32 = vrot.slane %v2163_v21, 3 }
 0x1ab   : > { %v664_v26 = vsel %vm354_vm3, %v3487_v17, %v2103_v50  ;;  %v620_v50 = vsel %vm348_vm1, %v3467_v56, %v2147_v51  ;;  %v3490_v17 = vrot.slane %v2214_v35, 5 }
 0x1ac   : > { %1188 = vrot.lane.b32.xlu0 %v2410_v42, %s1824_s10  ;;  %1203 = vrot.lane.b32.xlu1 %v1202_v25, %s1823_s9  ;;  %v760_v25 = vsel %vm348_vm1, %v759_v0, %v758_v46  ;;  %v2611_v46 = vsel %vm354_vm3, %v761_v49, %v1083_v53  ;;  %v2622_v0 = vsel %vm354_vm3, %v705_v16, %v1047_v28  ;;  %v3488_v53 = vrot.slane %v2151_v11, 6 }
 0x1ad   : > { %v2601_v40 = vsel %vm351_vm2, %v761_v49, %v760_v25  ;;  %v644_v49 = vrot.slane %v2189_v6, 3  ;;  %v669_v25 = vrot.slane %v2189_v6, 4  ;;  %v776_v16 = vsel %vm354_vm3, %v3489_v13, %v2106_v54 }
 0x1ae   : > { %v666_v36 = vsel %vm357_vm4, %v3488_v53, %v664_v26  ;;  %v3470_v54 = vrot.slane %v2185_v41, 6  ;;  %v3491_v53 = vrot.slane %v2151_v11, 2 }
 0x1af   : > { %v1009_v28 = vsel %vm366_vm7, %v644_v49, %v1008_v58  ;;  %v668_v26 = vsel %vm360_vm5, %v3490_v17, %v666_v36  ;;  %v3492_v36 = vrot.slane %v2214_v35, 1 }
 0x1b0   : > { %1194 = vrot.lane.b32.xlu0 %v2301_v2, %s1823_s9  ;;  %681 = vrot.lane.b32.xlu1 %v2589_v8, %s1824_s10  ;;  %v670_v58 = vsel %vm363_vm6, %v669_v25, %v668_v26  ;;  %v778_v13 = vsel %vm357_vm4, %v3491_v53, %v776_v16  ;;  %v2666_v56 = vpack.c.b16 %v1009_v28, %v1009_v28  ;;  %v3493_v26 = vrot.slane %v1916_v14, 3 }
 0x1b1   : > { %v672_v23 = vsel %vm366_vm7, %v3469_v32, %v670_v58  ;;  %v2664_v17 = vsel %vm360_vm5, %v3492_v36, %v778_v13  ;;  %v622_v34 = vsel %vm351_vm2, %v3470_v54, %v620_v50  ;;  %v3494_v16 = vrot.slane %v2163_v21, 5 }
 0x1b2   : > { %v2673_v44 = vpack.c.b16 %v672_v23, %v3493_v26  ;;  %v3495_v53 = vrot.slane %v2147_v51, 4  ;;  %v3496_v32 = vrot.slane %v2210_v4, 3  ;;  %v3497_v28 = vrot.slane %v2167_v24, 5 }
 0x1b3   : > { %v2693_v23 = vpack.c.b16 %v2505_v38, %v2505_v38  ;;  %v3498_v50 = vrot.slane %v2185_v41, 2  ;;  %v3505_v54 = vrot.slane %v2214_v35, 6 }
 0x1b4   : > { %1190 = vrot.lane.b32.xlu0 %v2280_v3, %s1823_s9  ;;  %793 = vrot.lane.b32.xlu1 %v2624_v18, %s1824_s10  ;;  %v1062_v58 = vsel %vm348_vm1, %v3495_v53, %v3494_v16  ;;  %v610_v36 = vsel %vm354_vm3, %v3497_v28, %v2116_v61  ;;  %v624_v61 = vpack.c.b16 %v622_v34, %v622_v34  ;;  %v3500_v53 = vrot.slane %v2214_v35, 3 }
 0x1b5   : > { %v1063_v13 = vsel %vm351_vm2, %v3496_v32, %v1062_v58  ;;  %v3499_v32 = vrot.slane %v2151_v11, 4  ;;  %v3501_v28 = vrot.slane %v2167_v24, 1  ;;  %v3502_v34 = vrot.slane %v2151_v11, 7 }
 0x1b6   : > { %v2698_v26 = vsel %vm354_vm3, %v3498_v50, %v1063_v13  ;;  %v693_v13 = vsel %vm354_vm3, %v2167_v24, %v2122_v43  ;;  %v698_v50 = vrot.slane %v2189_v6, 5 }
 0x1b7   : > { %v612_v16 = vsel %vm357_vm4, %v3499_v32, %v610_v36  ;;  %v720_v38 = vsel %vm354_vm3, %v3501_v28, %v2119_v62  ;;  %v695_v32 = vsel %vm357_vm4, %v3502_v34, %v693_v13  ;;  %v1025_v62 = vsel %vm366_vm7, %v669_v25, %v2462_v10 }
 0x1b8   : > { %1015 = vrot.lane.b32.xlu0 %v2666_v56, %s1824_s10  ;;  %1198 = vrot.lane.b32.xlu1 %v2271_v33, %s1823_s9  ;;  %v2706_v58 = vsel %vm360_vm5, %v3500_v53, %v612_v16  ;;  %v721_v36 = vsel %vm357_vm4, %v2151_v11, %v720_v38  ;;  %v3503_v16 = vrot.slane %v2167_v24, 4  ;;  %v3504_v28 = vrot.slane %v2214_v35, 7 }
 0x1b9   : > { %v697_v38 = vsel %vm360_vm5, %v3505_v54, %v695_v32  ;;  %v3507_v10 = vrot.slane %v2214_v35, 2  ;;  %v1029_v34 = vpack.c.b16 %v1025_v62, %v1025_v62 }
 0x1ba   : > { %v805_v53 = vsel %vm354_vm3, %v3503_v16, %v2128_v1  ;;  %v2730_v43 = vsel %vm360_vm5, %v3504_v28, %v721_v36  ;;  %v2742_v1 = vsel %vm363_vm6, %v698_v50, %v697_v38  ;;  %v3508_v36 = vrot.slane %v2167_v24, 6 }
 0x1bb   : > { %v807_v13 = vsel %vm357_vm4, %v3506_v20, %v805_v53  ;;  %v3509_v20 = vrot.slane %v2189_v6, 1  ;;  %v3510_v16 = vrot.slane %v2151_v11, 5  ;;  %v1045_v28 = vsel %vm366_vm7, %v698_v50, %v2475_v29 }
 0x1bc   : > { %979 = vrot.lane.b32.xlu0 %v2693_v23, %s1824_s10  ;;  %627 = vrot.lane.b32.xlu1 %v624_v61, %s1824_s10  ;;  %v809_v25 = vsel %vm360_vm5, %v3507_v10, %v807_v13  ;;  %v639_v54 = vsel %vm354_vm3, %v3508_v36, %v2138_v48  ;;  %v3511_v38 = vrot.slane %v2214_v35, 4  ;;  %v3512_v24 = vrot.slane %v2145_v27, 7 }
 0x1bd   : > { %v2754_v32 = vsel %vm363_vm6, %v3509_v20, %v809_v25  ;;  %v641_v53 = vsel %vm357_vm4, %v3510_v16, %v639_v54  ;;  %v3513_v48 = vrot.slane %v2208_v39, 6  ;;  %v3514_v29 = vrot.slane %v2183_v31, 5 }
 0x1be   : > { %v643_v13 = vsel %vm360_vm5, %v3511_v38, %v641_v53  ;;  %v3515_v27 = vrot.slane %v2165_v22, 4  ;;  %v2784_v50 = vpack.c.b16 %v1045_v28, %v1045_v28  ;;  %v734_v10 = vpack.c.b16 %v2491_v7, %v2491_v7 }
 0x1bf   : > { %v588_v62 = vsel %vm348_vm1, %v3513_v48, %v3512_v24  ;;  %v2773_v11 = vsel %vm363_vm6, %v644_v49, %v643_v13  ;;  %v1097_v31 = vsel %vm366_vm7, %v2189_v6, %v2520_v30  ;;  %v3517_v25 = vrot.slane %v2212_v63, 2 }
 0x1c0   : > { %1031 = vrot.lane.b32.xlu0 %v1029_v34, %s1822_s8  ;;  %685 = vrot.lane.b32.xlu1 %v2589_v8, %s1822_s8  ;;  %v2778_v35 = vsel %vm351_vm2, %v3514_v29, %v588_v62  ;;  %v583_v39 = vsel %vm354_vm3, %v3515_v27, %v2143_v12  ;;  %v3516_v8 = vrot.slane %v2149_v47, 3  ;;  %v3518_v12 = vrot.slane %v2187_v15, 1 }
 0x1c1   : > { %v615_v47 = vrot.slane %v2189_v6, 2  ;;  %v1101_v7 = vpack.c.b16 %v1097_v31, %v1097_v31  ;;  %v724_v15 = vrot.slane %v2189_v6, 6  ;;  %v2818_v54 = vpack.c.b16 %v2554_v37, %v2554_v37 }
 0x1c2   : > { %v584_v49 = vsel %vm357_vm4, %v3516_v8, %v583_v39  ;;  %v3521_v37 = vrot.slane %v2185_v41, 5  ;;  %v2841_v28 = vpack.c.b16 %v2611_v46, %v2611_v46  ;;  %v2848_v38 = vpack.c.b16 %v2601_v40, %v2601_v40 }
 0x1c3   : > { %v585_v36 = vsel %vm360_vm5, %v3517_v25, %v584_v49  ;;  %v989_v63 = vsel %vm366_vm7, %v615_v47, %v2549_v57  ;;  %v1061_v57 = vsel %vm366_vm7, %v724_v15, %v2575_v55  ;;  %v3522_v13 = vrot.slane %v2163_v21, 3 }
 0x1c4   : > { %1051 = vrot.lane.b32.xlu0 %v2784_v50, %s1824_s10  ;;  %737 = vrot.lane.b32.xlu1 %v734_v10, %s1824_s10  ;;  %v2803_v22 = vsel %vm363_vm6, %v3518_v12, %v585_v36  ;;  %v993_v30 = vpack.c.b16 %v989_v63, %v989_v63  ;;  %v1065_v16 = vpack.c.b16 %v1061_v57, %v1061_v57  ;;  %v3523_v24 = vrot.slane %v2147_v51, 2 }
 0x1c5   : > { %v3524_v46 = vrot.slane %v2210_v4, 1  ;;  %v2863_v29 = vpack.c.b16 %v2510_v45, %v2510_v45  ;;  %v782_v27 = vrot.slane %v2163_v21, 7  ;;  %v617_v49 = vrot.slane %v2163_v21, 1 }
 0x1c6   : > { %v1026_v48 = vsel %vm348_vm1, %v3523_v24, %v3522_v13  ;;  %v3526_v45 = vrot.slane %v2210_v4, 5  ;;  %v2885_v31 = vpack.c.b16 %v2622_v0, %v2622_v0  ;;  %v3527_v25 = vrot.slane %v2185_v41, 4 }
 0x1c7   : > { %v1027_v62 = vsel %vm351_vm2, %v3524_v46, %v1026_v48  ;;  %v990_v12 = vsel %vm348_vm1, %v2147_v51, %v617_v49  ;;  %v3530_v13 = vrot.slane %v1916_v14, 7 }
 0x1c8   : > { %1103 = vrot.lane.b32.xlu0 %v1101_v7, %s1822_s8  ;;  %797 = vrot.lane.b32.xlu1 %v2624_v18, %s1822_s8  ;;  %v3519_v18 = vrot.slane %v2147_v51, 7  ;;  %v1028_v40 = vsel %vm354_vm3, %v2185_v41, %v1027_v62 }
 0x1c9   : > { %v2871_v39 = vpack.c.b16 %v1028_v40, %v1028_v40  ;;  %v3531_v40 = vrot.slane %v1916_v14, 1 }
 0x1cc   : > { %995 = vrot.lane.b32.xlu0 %v993_v30, %s1822_s8  ;;  %631 = vrot.lane.b32.xlu1 %v624_v61, %s1822_s8  ;;  %v3520_v61 = vrot.slane %v2210_v4, 6 }
 0x1ce   : > { %v815_v20 = vsel %vm348_vm1, %v3520_v61, %v3519_v18  ;;  %v3529_v61 = vrot.slane %v2185_v41, 6  ;;  %v781_v41 = vsel %vm363_vm6, %v2189_v6, %v2664_v17  ;;  %v2936_v17 = vpack.c.b16 %v2698_v26, %v2698_v26 }
 0x1cf   : > { %v817_v53 = vsel %vm351_vm2, %v3521_v37, %v815_v20  ;;  %v725_v26 = vsel %vm363_vm6, %v724_v15, %v2730_v43  ;;  %v3533_v15 = vrot.slane %v1916_v14, 5 }
 0x1d0   : > { %1035 = vrot.lane.b32.xlu0 %v1029_v34, %s1823_s9  ;;  %711 = vrot.lane.b32.xlu1 %v2818_v54, %s1823_s9  ;;  %v819_v55 = vpack.c.b16 %v817_v53, %v817_v53  ;;  %v783_v53 = vsel %vm366_vm7, %v782_v27, %v781_v41 }
 0x1d1   : > { %v789_v24 = vpack.c.b16 %v783_v53, %v3530_v13 }
 0x1d4   : > { %1067 = vrot.lane.b32.xlu0 %v1065_v16, %s1822_s8  ;;  %741 = vrot.lane.b32.xlu1 %v734_v10, %s1822_s8  ;;  %v3525_v10 = vrot.slane %v2147_v51, 6 }
 0x1d6   : > { %v1098_v8 = vsel %vm348_vm1, %v3525_v10, %v782_v27 }
 0x1d8   : > { %1107 = vrot.lane.b32.xlu0 %v1101_v7, %s1823_s9  ;;  %822 = vrot.lane.b32.xlu1 %v819_v55, %s1823_s9  ;;  %v616_v55 = vsel %vm363_vm6, %v615_v47, %v2706_v58 }
 0x1d9   : > { %v618_v46 = vsel %vm366_vm7, %v617_v49, %v616_v55 }
 0x1da   : > { %v623_v27 = vpack.c.b16 %v618_v46, %v3531_v40 }
 0x1dc   : > { %999 = vrot.lane.b32.xlu0 %v993_v30, %s1823_s9  ;;  %1089 = vrot.lane.b32.xlu1 %v2841_v28, %s1824_s10 }
 0x1e0   : > { %1071 = vrot.lane.b32.xlu0 %v1065_v16, %s1823_s9  ;;  %767 = vrot.lane.b32.xlu1 %v2848_v38, %s1823_s9 }
 0x1e4   : > { %1233 = vrot.lane.b32.xlu0 %v1029_v34, %s1824_s10  ;;  %981 = vrot.lane.b32.xlu1 %v2863_v29, %s1824_s10  ;;  %v1099_v34 = vsel %vm351_vm2, %v3526_v45, %v1098_v8  ;;  %v3532_v8 = vrot.slane %v2163_v21, 5 }
 0x1e5   : > { %v1100_v36 = vsel %vm354_vm3, %v3527_v25, %v1099_v34 }
 0x1e6   : > { %v2902_v18 = vpack.c.b16 %v1100_v36, %v1100_v36  ;;  %v727_v49 = vsel %vm366_vm7, %v3532_v8, %v725_v26 }
 0x1e7   : > { %v733_v45 = vpack.c.b16 %v727_v49, %v3533_v15 }
 0x1e8   : > { %1249 = vrot.lane.b32.xlu0 %v1101_v7, %s1824_s10  ;;  %1033 = vrot.lane.b32.xlu1 %v2871_v39, %s1822_s8  ;;  %v3528_v7 = vrot.slane %v2210_v4, 7 }
 0x1ea   : > { %v991_v63 = vsel %vm351_vm2, %v3528_v7, %v990_v12 }
 0x1eb   : > { %v992_v20 = vsel %vm354_vm3, %v3529_v61, %v991_v63 }
 0x1ec   : > { %1225 = vrot.lane.b32.xlu0 %v993_v30, %s1824_s10  ;;  %1053 = vrot.lane.b32.xlu1 %v2885_v31, %s1824_s10  ;;  %v2898_v57 = vpop.permute.xlu1 %1017  ;;  %v2900_v0 = vpop.permute.xlu0 %1087  ;;  %v2914_v30 = vpack.c.b16 %v992_v20, %v992_v20 }
 0x1f0   : > { %1241 = vrot.lane.b32.xlu0 %v1065_v16, %s1824_s10  ;;  %1105 = vrot.lane.b32.xlu1 %v2902_v18, %s1822_s8  ;;  %v2910_v51 = vpop.permute.xlu1 %656  ;;  %v2912_v4 = vpop.permute.xlu0 %765 }
 0x1f4   : > { %1237 = vrot.lane.b32.xlu0 %v2784_v50, %s1823_s9  ;;  %997 = vrot.lane.b32.xlu1 %v2914_v30, %s1822_s8  ;;  %v523_v16 = vpop.permute.xlu1 %522  ;;  %v424_v37 = vpop.permute.xlu0 %423 }
 0x1f5   : > { %v953_v6 = vsel %vm550_vm9, %v2280_v3, %v424_v37  ;;  %v562_v12 = vsel %vm550_vm9, %v2410_v42, %v424_v37  ;;  %v576_v55 = vsel %vm550_vm9, %v2398_v9, %v523_v16 }
 0x1f8   : > { %679 = vrot.lane.b32.xlu0 %v2673_v44, %s1824_s10  ;;  %1037 = vrot.lane.b32.xlu1 %v2871_v39, %s1823_s9  ;;  %v473_v48 = vpop.permute.xlu1 %472 }
 0x1f9   : > { %v958_v9 = vsel %vm550_vm9, %v2301_v2, %v473_v48  ;;  %v569_v49 = vsel %vm550_vm9, %v2378_v59, %v473_v48 }
 0x1fa   : > { %v376_v62 = vpop.permute.xlu0 %375 }
 0x1fc   : > { %791 = vrot.lane.b32.xlu0 %v789_v24, %s1824_s10  ;;  %1069 = vrot.lane.b32.xlu1 %v2936_v17, %s1822_s8 }
 0x1fe   : > { %v2944_v58 = vpop.permute.xlu1 %947 }
 0x200   : > { %625 = vrot.lane.b32.xlu0 %v623_v27, %s1824_s10  ;;  %1109 = vrot.lane.b32.xlu1 %v2902_v18, %s1823_s9 }
 0x202   : > { %v2953_v47 = vpop.permute.xlu0 %943  ;;  %v549_v10 = vpop.permute.xlu1 %548 }
 0x203   : > { %v955_v25 = vsel %vm554_vm8, %v953_v6, %v2953_v47  ;;  %v553_v6 = vsel %vm550_vm9, %v2329_v60, %v376_v62 }
 0x204   : > { %683 = vrot.lane.b32.xlu0 %v2673_v44, %s1822_s8  ;;  %1001 = vrot.lane.b32.xlu1 %v2914_v30, %s1823_s9  ;;  %v963_v44 = vsel %vm550_vm9, %v2271_v33, %v523_v16 }
 0x205   : > { %v965_v61 = vsel %vm554_vm8, %v963_v44, %v2944_v58 }
 0x206   : > { %v449_v43 = vpop.permute.xlu0 %448  ;;  %v2966_v34 = vpop.permute.xlu1 %945  ;;  %v2987_v53 = vsel %vm557_vm10, %v965_v61, %v549_v10 }
 0x207   : > { %v2971_v36 = vsel %vm557_vm10, %v955_v25, %v449_v43  ;;  %v1318_v40 = vrot.slane %v2987_v53, 2 }
 0x208   : > { %735 = vrot.lane.b32.xlu0 %v733_v45, %s1824_s10  ;;  %1073 = vrot.lane.b32.xlu1 %v2936_v17, %s1823_s9  ;;  %v1316_v20 = vrot.slane %v2971_v36, 2 }
 0x20a   : > { %v2980_v7 = vpop.permute.xlu0 %941  ;;  %v426_v63 = vpop.permute.xlu1 %425 }
 0x20b   : > { %v564_v41 = vsel %vm554_vm8, %v562_v12, %v426_v63  ;;  %v950_v15 = vsel %vm554_vm8, %v553_v6, %v2980_v7 }
 0x20c   : > { %795 = vrot.lane.b32.xlu0 %v789_v24, %s1822_s8  ;;  %1235 = vrot.lane.b32.xlu1 %v2871_v39, %s1824_s10  ;;  %v566_v42 = vsel %vm557_vm10, %v564_v41, %v449_v43  ;;  %v3534_v24 = vrot.slane %v2163_v21, 4  ;;  %v3535_v43 = vrot.slane %v1916_v14, 4 }
 0x20d   : > { %v1340_v37 = vsel %vm1335_vm11, %v566_v42, %v1316_v20  ;;  %v812_v42 = vsel %vm366_vm7, %v2163_v21, %v2754_v32  ;;  %v3536_v32 = vrot.slane %v2163_v21, 2 }
 0x20e   : > { %v401_v13 = vpop.permute.xlu0 %400  ;;  %v525_v46 = vpop.permute.xlu1 %524  ;;  %1417 = vmatprep.subr.bf16.mxu1 %v1340_v37  ;;  %v701_v39 = vsel %vm366_vm7, %v3534_v24, %v2742_v1  ;;  %v960_v1 = vsel %vm554_vm8, %v958_v9, %v2966_v34 }
 0x20f   : > { %v578_v26 = vsel %vm554_vm8, %v576_v55, %v525_v46  ;;  %v951_v48 = vsel %vm557_vm10, %v950_v15, %v401_v13  ;;  %v818_v46 = vpack.c.b16 %v812_v42, %v1916_v14 }
 0x210   : > { %629 = vrot.lane.b32.xlu0 %v623_v27, %s1822_s8  ;;  %1251 = vrot.lane.b32.xlu1 %v2902_v18, %s1824_s10  ;;  %v580_v8 = vsel %vm557_vm10, %v578_v26, %v549_v10  ;;  %v3019_v18 = vpack.c.b16 %v701_v39, %v3535_v43  ;;  %v1315_v41 = vrot.slane %v951_v48, 2  ;;  %v3537_v39 = vrot.slane %v1916_v14, 2 }
 0x211   : > { %v1346_v16 = vsel %vm1335_vm11, %v580_v8, %v1318_v40 }
 0x212   : > { %v499_v27 = vpop.permute.xlu0 %498  ;;  %1458 = vmatprep.subr.bf16.mxu0 %v1346_v16  ;;  %v475_v10 = vpop.permute.xlu1 %474 }
 0x213   : > { %v3024_v25 = vsel %vm557_vm10, %v960_v1, %v499_v27  ;;  %v571_v59 = vsel %vm554_vm8, %v569_v49, %v475_v10 }
 0x214   : > { %v1317_v62 = vrot.slane %v3024_v25, 2  ;;  %709 = vrot.lane.b32.xlu0 %v3019_v18, %s1823_s9  ;;  %v573_v44 = vsel %vm557_vm10, %v571_v59, %v499_v27  ;;  %1227 = vrot.lane.b32.xlu1 %v2914_v30, %s1824_s10 }
 0x216   : > { %v378_v12 = vpop.permute.xlu0 %377  ;;  %v1201_v63 = vpop.permute.xlu1 %1200  ;;  %v1343_v61 = vsel %vm1335_vm11, %v573_v44, %v1317_v62 }
 0x217   : > { %v556_v53 = vsel %vm554_vm8, %v553_v6, %v378_v12  ;;  %1459 = vmatpush1.bf16.msra.mxu0 %v1343_v61  ;;  %v1221_v24 = vsel %vm550_vm9, %v2271_v33, %v1201_v63  ;;  %v591_v63 = vpack.c.b16 %v2778_v35, %v2778_v35 }
 0x218   : > { %739 = vrot.lane.b32.xlu0 %v733_v45, %s1822_s8  ;;  %v559_v37 = vsel %vm557_vm10, %v556_v53, %v401_v13  ;;  %1243 = vrot.lane.b32.xlu1 %v2936_v17, %s1824_s10  ;;  %v647_v45 = vsel %vm366_vm7, %v3536_v32, %v2773_v11  ;;  %v1825_v17 = vmov 0   ;;  %v1222_v21 = vsel %vm554_vm8, %v1221_v24, %v2944_v58  ;;  %s1762_s8 = sshll.u32 %s1826_s7, 4  ;;  %s1763_s8 = int_to_ptr.vmem [resolvable:$false] %s1762_s8 }
 0x219   : > { %v1337_v30 = vsel %vm1335_vm11, %v559_v37, %v1315_v41  ;;  %1490 = vmatprep.mubr.bf16.mxu0 %v1825_v17  ;;  %1449 = vmatprep.mubr.bf16.mxu1 %v1825_v17  ;;  %v3060_v8 = vpack.c.b16 %v647_v45, %v3537_v39  ;;  %v3111_v37 = vld [vmem:[%s3420_s2] sm:$0xf]  ;;  %v1155_v32 = vsel %vm550_vm9, %v2235_v52, %v2900_v0  ;;  %p1765_p0 = scmp.lt.s32.totalorder %s3376_s28, %s1763_s8 }
 0x21a   : > { %1418 = vmatpush1.bf16.msra.mxu1 %v1337_v30  ;;  %v1193_v55 = vpop.permute.xlu0 %1192  ;;  %v1197_v26 = vpop.permute.xlu1 %1196  ;;  %1752 = vset.pattern.permute.xlu0 %v1825_v17 }
 0x21b   : > { %v1211_v11 = vsel %vm550_vm9, %v2280_v3, %v1193_v55 }
 0x21c   : > { %820 = vrot.lane.b32.xlu0 %v818_v46, %s1823_s9  ;;  %1239 = vrot.lane.b32.xlu1 %v2885_v31, %s1823_s9  ;;  %v1212_v14 = vsel %vm554_vm8, %v1211_v11, %v2953_v47 }
 0x21e   : > { %v1189_v13 = vpop.permute.xlu0 %1188  ;;  %v1204_v33 = vpop.permute.xlu1 %1203 }
 0x21f   : > { %v1224_v9 = vsel %vm557_vm10, %v1222_v21, %v1204_v33  ;;  %v1206_v3 = vsel %vm550_vm9, %v2329_v60, %v1189_v13  ;;  %v1216_v60 = vsel %vm550_vm9, %v2301_v2, %v1197_v26 }
 0x220   : > { %654 = vrot.lane.b32.xlu0 %v3060_v8, %s1823_s9  ;;  %v1330_v16 = vrot.slane %v1224_v9, 4  ;;  %1231 = vrot.lane.b32.xlu1 %v2233_v5, %s1823_s9  ;;  %v1207_v47 = vsel %vm554_vm8, %v1206_v3, %v2980_v7  ;;  %v1390_v7 = vld [vmem:[%s3421_s3] sm:$0xff] }
 0x222   : > { %v1195_v58 = vpop.permute.xlu0 %1194  ;;  %v682_v49 = vpop.permute.xlu1 %681  ;;  %v1375_v6 = vsel %vm1175_vm12, %v1318_v40, %v1330_v16 }
 0x223   : > { %v1214_v1 = vsel %vm557_vm10, %v1212_v14, %v1195_v58  ;;  %1460 = vmatprep.subr.bf16.mxu0 %v1375_v6  ;;  %v843_v35 = vsel %vm550_vm9, %v2237_v19, %v682_v49 }
 0x224   : > { %v1328_v27 = vrot.slane %v1214_v1, 4  ;;  %1229 = vrot.lane.b32.xlu0 %v2666_v56, %s1823_s9  ;;  %1247 = vrot.lane.b32.xlu1 %v2841_v28, %s1823_s9 }
 0x226   : > { %v1191_v43 = vpop.permute.xlu0 %1190  ;;  %v1369_v40 = vsel %vm1175_vm12, %v1316_v20, %v1328_v27  ;;  %v794_v10 = vpop.permute.xlu1 %793  ;;  %v1217_v20 = vsel %vm554_vm8, %v1216_v60, %v2966_v34 }
 0x227   : > { %v1209_v15 = vsel %vm557_vm10, %v1207_v47, %v1191_v43  ;;  %1419 = vmatprep.subr.bf16.mxu1 %v1369_v40  ;;  %v871_v45 = vsel %vm550_vm9, %v2848_v38, %v794_v10 }
 0x228   : > { %v1327_v59 = vrot.slane %v1209_v15, 4  ;;  %1245 = vrot.lane.b32.xlu0 %v2235_v52, %s1823_s9  ;;  %s1764_s9 = scalar_lea.vmem %s1763_s8, 2048 }
 0x229   : > { %p1766_p1 = scmp.lt.s32.totalorder %s1764_s9, %s1758_s6 }
 0x22a   : > { %v1016_v48 = vpop.permute.xlu0 %1015  ;;  %v1366_v36 = vsel %vm1175_vm12, %v1315_v41, %v1327_v59  ;;  %v1199_v44 = vpop.permute.xlu1 %1198  ;;  %v1401_v53 = vsel %vm1400_vm13, %v1327_v59, 0 }
 0x22b   : > { %1420 = vmatpush1.bf16.msra.mxu1 %v1366_v36  ;;  %v1219_v2 = vsel %vm557_vm10, %v1217_v20, %v1199_v44  ;;  %v1127_v25 = vsel %vm550_vm9, %v2666_v56, %v1016_v48  ;;  %p1767_p2 = por %p1766_p1, %p1765_p0 }
 0x22c   : > { %1679 = vmatprep.subr.msk.bf16.mxu1 %vm1400_vm13, %v1328_v27  ;;  %v1329_v12 = vrot.slane %v1219_v2, 4  ;;  %1393 = vperm.xlu0 %1752, %v1390_v7  }
 0x22d   : > { %p1768_p3 = pnand %p1767_p2, %p1761_p13 }
 0x22e   : > { %v980_v61 = vpop.permute.xlu0 %979  ;;  %v628_v42 = vpop.permute.xlu1 %627  ;;  %v1372_v34 = vsel %vm1175_vm12, %v1317_v62, %v1329_v12  ;;  %v1405_v55 = vsel %vm1400_vm13, %v1329_v12, 0 }
 0x22f   : > { %1422 = vmatpush1.bf16.msra.mxu1 %v1401_v53  ;;  %v829_v41 = vsel %vm550_vm9, %v591_v63, %v628_v42  ;;  %1461 = vmatpush1.bf16.msra.mxu0 %v1372_v34  ;;  %v1113_v11 = vsel %vm550_vm9, %v2693_v23, %v980_v61 }
 0x230   : > { %1681 = vmatprep.subr.msk.bf16.mxu0 %vm1400_vm13, %v1330_v16 }
 0x232   : > { %v3117_v30 = vpop.permute.xlu0 %1031  ;;  %v686_v62 = vpop.permute.xlu1 %685  ;;  %1680 = vmatmul.mubr.msk.bf16.vlgmr.msra.gmra.mrb[0].mxu1 %vm1396_vm14, %v3111_v37 }
 0x233   : > { %v1132_v46 = vsel %vm554_vm8, %v1127_v25, %v3117_v30  ;;  %v847_v26 = vsel %vm554_vm8, %v843_v35, %v686_v62  ;;  %1463 = vmatpush1.bf16.msra.mxu0 %v1405_v55  ;;  %1531 = vmatprep.mubr.bf16.mxu1 %v1825_v17  ;;  %v1130_v55 = vsel %vm550_vm9, %v2233_v5, %v2898_v57 }
 0x236   : > { %v1052_v19 = vpop.permute.xlu0 %1051  ;;  %v738_v24 = vpop.permute.xlu1 %737  ;;  %1682 = vmatmul.mubr.msk.bf16.vlgmr.msra.gmra.mrb[8].mxu0 %vm1396_vm14, %v3111_v37 }
 0x237   : > { %1572 = vmatprep.mubr.bf16.mxu0 %v1825_v17  ;;  %v1141_v6 = vsel %vm550_vm9, %v2784_v50, %v1052_v19  ;;  %v857_v3 = vsel %vm550_vm9, %v2818_v54, %v738_v24 }
 0x23a   : > { %v1104_v13 = vpop.permute.xlu0 %1103  ;;  %v798_v39 = vpop.permute.xlu1 %797 }
 0x23b   : > { %v1160_v21 = vsel %vm554_vm8, %v1155_v32, %v1104_v13  ;;  %v875_v33 = vsel %vm554_vm8, %v871_v45, %v798_v39 }
 0x23e   : > { %v3138_v9 = vpop.permute.xlu0 %995  ;;  %v632_v16 = vpop.permute.xlu1 %631 }
 0x23f   : > { %v1118_v17 = vsel %vm554_vm8, %v1113_v11, %v3138_v9  ;;  %v833_v0 = vsel %vm554_vm8, %v829_v41, %v632_v16 }
 0x240   : > { %v837_v16 = vsel %vm557_vm10, %v833_v0, %v2910_v51 }
 0x242   : > { %v1036_v14 = vpop.permute.xlu0 %1035  ;;  %v712_v58 = vpop.permute.xlu1 %711 }
 0x243   : > { %v1136_v38 = vsel %vm557_vm10, %v1132_v46, %v1036_v14  ;;  %v851_v49 = vsel %vm557_vm10, %v847_v26, %v712_v58 }
 0x244   : > { %v1179_v24 = vrot.slane %v1136_v38, 4  ;;  %v906_v14 = vshll.u32 %v851_v49, 16 }
 0x246   : > { %v3149_v1 = vpop.permute.xlu0 %1067  ;;  %v742_v27 = vpop.permute.xlu1 %741 }
 0x247   : > { %v1146_v47 = vsel %vm554_vm8, %v1141_v6, %v3149_v1  ;;  %v861_v43 = vsel %vm554_vm8, %v857_v3, %v742_v27  ;;  %v888_v27 = vshrl.u32 %v837_v16, 16 }
 0x24a   : > { %v1108_v40 = vpop.permute.xlu0 %1107  ;;  %v823_v10 = vpop.permute.xlu1 %822 }
 0x24b   : > { %v3155_v60 = vsel %vm557_vm10, %v1160_v21, %v1108_v40  ;;  %v879_v15 = vsel %vm557_vm10, %v875_v33, %v823_v10  ;;  %v3538_v10 = vld [vmem:[#allocation6_spill] sm:$0xff] }
 0x24c   : > { %v933_v58 = vshrl.u32 %v879_v15, 16  ;;  %v936_v38 = vshll.u32 %v879_v15, 16 }
 0x24e   : > { %v1000_v59 = vpop.permute.xlu0 %999  ;;  %v1090_v7 = vpop.permute.xlu1 %1089  ;;  %v3210_v0 = vrot.slane %v933_v58, 3 }
 0x24f   : > { %v3159_v48 = vsel %vm557_vm10, %v1118_v17, %v1000_v59  ;;  %v903_v17 = vshrl.u32 %v851_v49, 16  ;;  %v3202_v59 = vsel %vm366_vm7, %v3538_v10, %v2803_v22  ;;  %v1158_v51 = vsel %vm550_vm9, %v2841_v28, %v1090_v7 }
 0x250   : > { %v3212_v49 = vrot.slane %v936_v38, 4 }
 0x252   : > { %v1072_v54 = vpop.permute.xlu0 %1071  ;;  %v768_v36 = vpop.permute.xlu1 %767  ;;  %v939_v58 = vor.u32 %v3212_v49, %v3210_v0 }
 0x256   : > { %v1234_v20 = vpop.permute.xlu0 %1233  ;;  %v3161_v44 = vpop.permute.xlu1 %981 }
 0x25a   : > { %v1250_v2 = vpop.permute.xlu0 %1249  ;;  %v3163_v12 = vpop.permute.xlu1 %1033 }
 0x25b   : > { %v1284_v63 = vsel %vm550_vm9, %v2235_v52, %v1250_v2  ;;  %v1134_v52 = vsel %vm554_vm8, %v1130_v55, %v3163_v12  ;;  %v891_v2 = vshll.u32 %v837_v16, 16 }
 0x25c   : > { %v1287_v61 = vsel %vm554_vm8, %v1284_v63, %v1104_v13  ;;  %v3204_v63 = vrot.slane %v903_v17, 3  ;;  %v1264_v17 = vsel %vm550_vm9, %v2666_v56, %v1234_v20 }
 0x25d   : > { %v3169_v53 = vsel %vm557_vm10, %v1287_v61, %v1108_v40  ;;  %v865_v40 = vsel %vm557_vm10, %v861_v43, %v768_v36  ;;  %v3206_v61 = vrot.slane %v906_v14, 4  ;;  %v3223_v7 = vrot.slane %v891_v2, 4 }
 0x25e   : > { %v3171_v42 = vpop.permute.xlu0 %1225  ;;  %v1054_v34 = vpop.permute.xlu1 %1053  ;;  %v918_v55 = vshrl.u32 %v865_v40, 16  ;;  %v921_v22 = vshll.u32 %v865_v40, 16  ;;  %v1185_v14 = vrot.slane %v3155_v60, 4  ;;  %v1308_v56 = vrot.slane %v3169_v53, 4 }
 0x25f   : > { %v909_v16 = vor.u32 %v3206_v61, %v3204_v63  ;;  %v1144_v60 = vsel %vm550_vm9, %v2885_v31, %v1054_v34  ;;  %v1267_v20 = vsel %vm554_vm8, %v1264_v17, %v3117_v30  ;;  %v1254_v61 = vsel %vm550_vm9, %v2693_v23, %v3171_v42 }
 0x260   : > { %v3235_v10 = vrot.slane %v918_v55, 3 }
 0x262   : > { %v3173_v41 = vpop.permute.xlu0 %1241  ;;  %v1106_v35 = vpop.permute.xlu1 %1105 }
 0x263   : > { %v1162_v15 = vsel %vm554_vm8, %v1158_v51, %v1106_v35 }
 0x266   : > { %v3175_v25 = vpop.permute.xlu0 %1237  ;;  %v3177_v62 = vpop.permute.xlu1 %997 }
 0x267   : > { %v1270_v42 = vsel %vm557_vm10, %v1267_v20, %v3175_v25 }
 0x268   : > { %v1302_v25 = vrot.slane %v1270_v42, 4 }
 0x26a   : > { %v680_v46 = vpop.permute.xlu0 %679  ;;  %v1038_v26 = vpop.permute.xlu1 %1037 }
 0x26b   : > { %v1138_v19 = vsel %vm557_vm10, %v1134_v52, %v1038_v26  ;;  %v1150_v26 = vsel %vm557_vm10, %v1146_v47, %v1072_v54  ;;  %v1176_v47 = vrot.slane %v3159_v48, 4  ;;  %v840_v51 = vsel %vm550_vm9, %v3060_v8, %v680_v46 }
 0x26c   : > { %v1180_v32 = vrot.slane %v1138_v19, 4  ;;  %v3539_v19 = vld [vmem:[#allocation5_spill] sm:$0xff]  ;;  %v1182_v40 = vrot.slane %v1150_v26, 4  ;;  %v1116_v8 = vsel %vm550_vm9, %v2863_v29, %v3161_v44 }
 0x26d   : > { %v1120_v26 = vsel %vm554_vm8, %v1116_v8, %v3177_v62 }
 0x26e   : > { %v3185_v45 = vpop.permute.xlu0 %791  ;;  %v3187_v13 = vpop.permute.xlu1 %1069  ;;  %v3190_v39 = vsel %vm1175_vm12, %v1179_v24, %v1180_v32  ;;  %v590_v24 = vpack.c.b16 %v3202_v59, %v3539_v19  ;;  %v3221_v32 = vrot.slane %v888_v27, 3  ;;  %v3237_v59 = vrot.slane %v921_v22, 4 }
 0x270   : > { %v924_v23 = vor.u32 %v3237_v59, %v3235_v10  ;;  %v3540_v59 = vld [vmem:[#allocation7_spill] sm:$0xff] }
 0x272   : > { %v3192_v21 = vpop.permute.xlu0 %625  ;;  %v1110_v33 = vpop.permute.xlu1 %1109 }
 0x273   : > { %v1166_v52 = vsel %vm557_vm10, %v1162_v15, %v1110_v33 }
 0x274   : > { %v1186_v54 = vrot.slane %v1166_v52, 4 }
 0x276   : > { %v684_v57 = vpop.permute.xlu0 %683  ;;  %v3194_v11 = vpop.permute.xlu1 %1001 }
 0x277   : > { %v845_v15 = vsel %vm554_vm8, %v840_v51, %v684_v57 }
 0x27a   : > { %v736_v6 = vpop.permute.xlu0 %735  ;;  %v1074_v3 = vpop.permute.xlu1 %1073 }
 0x27e   : > { %v3215_v43 = vpop.permute.xlu0 %795  ;;  %v1236_v36 = vpop.permute.xlu1 %1235 }
 0x282   : > { %v3233_v38 = vpop.permute.xlu0 %629  ;;  %v1252_v27 = vpop.permute.xlu1 %1251 }
 0x283   : > { %v1286_v2 = vsel %vm550_vm9, %v2841_v28, %v1252_v27  ;;  %v1148_v28 = vsel %vm554_vm8, %v1144_v60, %v3187_v13 }
 0x284   : > { %v1288_v63 = vsel %vm554_vm8, %v1286_v2, %v1106_v35  ;;  %v1152_v34 = vsel %vm557_vm10, %v1148_v28, %v1074_v3  ;;  %v3258_v35 = vsel %vm1175_vm12, %v1185_v14, %v1186_v54  ;;  %v3270_v3 = vsel %vm554_vm8, %v1254_v61, %v3138_v9 }
 0x285   : > { %v1290_v53 = vsel %vm557_vm10, %v1288_v63, %v1110_v33  ;;  %v1183_v19 = vrot.slane %v1152_v34, 4  ;;  %v1322_v44 = vrot.slane %v3258_v35, 2  ;;  %v854_v14 = vsel %vm550_vm9, %v3019_v18, %v736_v6 }
 0x286   : > { %v1309_v55 = vrot.slane %v1290_v53, 4  ;;  %v710_v30 = vpop.permute.xlu0 %709  ;;  %v1228_v22 = vpop.permute.xlu1 %1227  ;;  %v868_v2 = vsel %vm550_vm9, %v3540_v59, %v3185_v45  ;;  %v826_v18 = vsel %vm550_vm9, %v590_v24, %v3192_v21  ;;  %v1320_v45 = vrot.slane %v3190_v39, 2 }
 0x287   : > { %v849_v46 = vsel %vm557_vm10, %v845_v15, %v710_v30  ;;  %v873_v28 = vsel %vm554_vm8, %v868_v2, %v3215_v43  ;;  %v1256_v21 = vsel %vm550_vm9, %v2863_v29, %v1228_v22 }
 0x288   : > { %v896_v33 = vshrl.u32 %v849_v46, 16  ;;  %v899_v57 = vshll.u32 %v849_v46, 16  ;;  %v3273_v52 = vsel %vm1175_vm12, %v1308_v56, %v1309_v55  ;;  %v1266_v56 = vsel %vm550_vm9, %v2233_v5, %v1236_v36 }
 0x289   : > { %v1334_v17 = vrot.slane %v3273_v52, 4  ;;  %v1124_v5 = vsel %vm557_vm10, %v1120_v26, %v3194_v11  ;;  %v3302_v36 = vsel %vm1175_vm12, %v1182_v40, %v1183_v19  ;;  %v1258_v26 = vsel %vm554_vm8, %v1256_v21, %v3177_v62 }
 0x28a   : > { %v898_v54 = vrot.slane %v896_v33, 3  ;;  %v901_v27 = vrot.slane %v899_v57, 4  ;;  %v740_v10 = vpop.permute.xlu0 %739  ;;  %v1244_v9 = vpop.permute.xlu1 %1243  ;;  %v1177_v55 = vrot.slane %v1124_v5, 4  ;;  %v1321_v29 = vrot.slane %v3302_v36, 2 }
 0x28b   : > { %v859_v60 = vsel %vm554_vm8, %v854_v14, %v740_v10  ;;  %v3292_v20 = vsel %vm1175_vm12, %v1322_v44, %v1334_v17  ;;  %v1276_v42 = vsel %vm550_vm9, %v2885_v31, %v1244_v9  ;;  %v1274_v10 = vsel %vm550_vm9, %v2784_v50, %v3173_v41 }
 0x28c   : > { %v902_v6 = vor.u32 %v901_v27, %v898_v54  ;;  %v863_v63 = vsel %vm557_vm10, %v859_v60, %v2912_v4  ;;  %v1268_v4 = vsel %vm554_vm8, %v1266_v56, %v3163_v12  ;;  %v1178_v62 = vsel %vm1175_vm12, %v1176_v47, %v1177_v55 }
 0x28d   : > { %v911_v61 = vshrl.u32 %v863_v63, 16  ;;  %v914_v51 = vshll.u32 %v863_v63, 16  ;;  %v1278_v56 = vsel %vm554_vm8, %v1276_v42, %v3187_v13  ;;  %v894_v5 = vor.u32 %v3223_v7, %v3221_v32 }
 0x28e   : > { %v821_v24 = vpop.permute.xlu0 %820  ;;  %v910_v53 = vsel %vm880_vm15, %v902_v6, %v909_v16  ;;  %v1240_v39 = vpop.permute.xlu1 %1239  ;;  %v831_v16 = vsel %vm554_vm8, %v826_v18, %v3233_v38  ;;  %v1319_v0 = vrot.slane %v1178_v62, 2  ;;  %v1277_v35 = vsel %vm554_vm8, %v1274_v10, %v3149_v1 }
 0x28f   : > { %v913_v15 = vrot.slane %v911_v61, 3  ;;  %v916_v11 = vrot.slane %v914_v51, 4  ;;  %v877_v40 = vsel %vm557_vm10, %v873_v28, %v821_v24  ;;  %v1354_v34 = vsel %vm1335_vm11, %v910_v53, %v1320_v45 }
 0x290   : > { %v926_v30 = vshrl.u32 %v877_v40, 16  ;;  %v929_v8 = vshll.u32 %v877_v40, 16  ;;  %1499 = vmatprep.subr.bf16.mxu1 %v1354_v34  ;;  %v1272_v43 = vsel %vm557_vm10, %v1268_v4, %v1240_v39 }
 0x291   : > { %v917_v22 = vor.u32 %v916_v11, %v913_v15  ;;  %v1303_v12 = vrot.slane %v1272_v43, 4 }
 0x292   : > { %v928_v46 = vrot.slane %v926_v30, 3  ;;  %v931_v33 = vrot.slane %v929_v8, 4  ;;  %v655_v57 = vpop.permute.xlu0 %654  ;;  %v1232_v19 = vpop.permute.xlu1 %1231 }
 0x293   : > { %v835_v14 = vsel %vm557_vm10, %v831_v16, %v655_v57  ;;  %v1262_v54 = vsel %vm557_vm10, %v1258_v26, %v1232_v19  ;;  %v925_v27 = vsel %vm880_vm15, %v917_v22, %v924_v23  ;;  %v1304_v38 = vsel %vm1175_vm12, %v1302_v25, %v1303_v12 }
 0x294   : > { %v932_v31 = vor.u32 %v931_v33, %v928_v46  ;;  %v881_v9 = vshrl.u32 %v835_v14, 16  ;;  %v884_v59 = vshll.u32 %v835_v14, 16  ;;  %v1358_v2 = vsel %vm1335_vm11, %v925_v27, %v1321_v29 }
 0x295   : > { %v1332_v60 = vrot.slane %v1304_v38, 4  ;;  %v1300_v25 = vrot.slane %v1262_v54, 4 }
 0x296   : > { %v883_v23 = vrot.slane %v881_v9, 3  ;;  %v886_v18 = vrot.slane %v884_v59, 4  ;;  %v1230_v6 = vpop.permute.xlu0 %1229  ;;  %v940_v50 = vsel %vm880_vm15, %v932_v31, %v939_v58  ;;  %v1248_v41 = vpop.permute.xlu1 %1247 }
 0x297   : > { %v1260_v48 = vsel %vm557_vm10, %v3270_v3, %v1230_v6  ;;  %v1362_v47 = vsel %vm1335_vm11, %v940_v50, %v1322_v44  ;;  %v1282_v13 = vsel %vm557_vm10, %v1278_v56, %v1248_v41  ;;  %v1381_v63 = vsel %vm1175_vm12, %v1320_v45, %v1332_v60 }
 0x298   : > { %v887_v36 = vor.u32 %v886_v18, %v883_v23  ;;  %v1299_v61 = vrot.slane %v1260_v48, 4  ;;  %1540 = vmatprep.subr.bf16.mxu0 %v1362_v47  ;;  %v1306_v58 = vrot.slane %v1282_v13, 4 }
 0x299   : > { %1541 = vmatpush1.bf16.msra.mxu0 %v1358_v2 }
 0x29a   : > { %v1301_v49 = vsel %vm1175_vm12, %v1299_v61, %v1300_v25  ;;  %1542 = vmatprep.subr.bf16.mxu0 %v3292_v20  ;;  %v1246_v3 = vpop.permute.xlu0 %1245  ;;  %v895_v44 = vsel %vm880_vm15, %v887_v36, %v894_v5 }
 0x29b   : > { %v1331_v45 = vrot.slane %v1301_v49, 4  ;;  %v1280_v51 = vsel %vm557_vm10, %v1277_v35, %v1246_v3  ;;  %v1350_v32 = vsel %vm1335_vm11, %v895_v44, %v1319_v0 }
 0x29c   : > { %v1305_v7 = vrot.slane %v1280_v51, 4  ;;  %1500 = vmatpush1.bf16.msra.mxu1 %v1350_v32 }
 0x29d   : > { %1501 = vmatprep.subr.bf16.mxu1 %v1381_v63  ;;  %v1378_v28 = vsel %vm1175_vm12, %v1319_v0, %v1331_v45  ;;  %v1409_v24 = vsel %vm1400_vm13, %v1331_v45, 0 }
 0x29e   : > { %v1307_v20 = vsel %vm1175_vm12, %v1305_v7, %v1306_v58 }
 0x29f   : > { %v1333_v21 = vrot.slane %v1307_v20, 4 }
 0x2a0   : > { %1502 = vmatpush1.bf16.msra.mxu1 %v1378_v28 }
 0x2a1   : > { %1683 = vmatprep.subr.msk.bf16.mxu1 %vm1400_vm13, %v1332_v60  ;;  %v1384_v1 = vsel %vm1175_vm12, %v1321_v29, %v1333_v21  ;;  %v1413_v53 = vsel %vm1400_vm13, %v1333_v21, 0 }
 0x2a2   : > { %1543 = vmatpush1.bf16.msra.mxu0 %v1384_v1 }
 0x2a3   : > { %1685 = vmatprep.subr.msk.bf16.mxu0 %vm1400_vm13, %v1334_v17 }
 0x2a4   : > { %1504 = vmatpush1.bf16.msra.mxu1 %v1409_v24 }
 0x2a6   : > { %1545 = vmatpush1.bf16.msra.mxu0 %v1413_v53 }
 0x2a7   : > { %1684 = vmatmul.mubr.msk.bf16.vlgmr.msra.gmra.mrb[4].mxu1 %vm1396_vm14, %v3111_v37 }
 0x2a9   : > { %1686 = vmatmul.mubr.msk.bf16.vlgmr.msra.gmra.mrb[12].mxu0 %vm1396_vm14, %v3111_v37 }
 0x2ab   : > { %v1394_v4 = vpop.permute.xlu0 %1393 }
 0x305   : > { %v1451_v39 = vpop.f32.mrb[0].mxu1 }
 0x306   : > { %v1453_v52 = vpop.f32.mrb[1].mxu1  ;;  %v1452_v15 = vadd.f32 %v1451_v39, %v1394_v4 }
 0x307   : > { %v1455_v17 = vpop.f32.mrb[2].mxu1  ;;  %v1454_v11 = vadd.f32 %v1453_v52, %v1394_v4 }
 0x308   : > { %v1456_v40 = vpop.f32.mrb[3].mxu1  ;;  %1581 = vst [vmem:[%s190_s23] sm:$0xff] %v1452_v15 }
 0x309   : > { %v1492_v34 = vpop.f32.mrb[8].mxu0  ;;  %1582 = vst [vmem:[%s190_s23 + $0x8] sm:$0xff] %v1454_v11 }
 0x30a   : > { %v1494_v55 = vpop.f32.mrb[9].mxu0  ;;  %v1493_v30 = vadd.f32 %v1492_v34, %v1394_v4 }
 0x30b   : > { %v1496_v8 = vpop.f32.mrb[10].mxu0  ;;  %v1495_v43 = vadd.f32 %v1494_v55, %v1394_v4 }
 0x30c   : > { %v1497_v37 = vpop.f32.mrb[11].mxu0  ;;  %1583 = vst [vmem:[%s190_s23 + $0x10] sm:$0xff] %v1493_v30 }
 0x30d   : > { %1584 = vst [vmem:[%s190_s23 + $0x18] sm:$0xff] %v1495_v43 }
 0x37a   : > { %v1533_v29 = vpop.f32.mrb[4].mxu1 }
 0x37b   : > { %v1534_v16 = vadd.f32 %v1533_v29, %v1394_v4  ;;  %v1535_v22 = vpop.f32.mrb[5].mxu1 }
 0x37c   : > { %v1536_v12 = vadd.f32 %v1535_v22, %v1394_v4  ;;  %v1537_v42 = vpop.f32.mrb[6].mxu1  ;;  %v1574_v46 = vpop.f32.mrb[12].mxu0 }
 0x37d   : > { %1585 = vst [vmem:[%s190_s23 + $0x20] sm:$0xff] %v1534_v16  ;;  %v1575_v33 = vadd.f32 %v1574_v46, %v1394_v4  ;;  %v1538_v57 = vpop.f32.mrb[7].mxu1  ;;  %v1576_v26 = vpop.f32.mrb[13].mxu0 }
 0x37e   : > { %1586 = vst [vmem:[%s190_s23 + $0x28] sm:$0xff] %v1536_v12  ;;  %v1577_v19 = vadd.f32 %v1576_v26, %v1394_v4  ;;  %v1578_v14 = vpop.f32.mrb[14].mxu0 }
 0x37f   : > { %1587 = vst [vmem:[%s190_s23 + $0x30] sm:$0xff] %v1575_v33  ;;  %v1579_v54 = vpop.f32.mrb[15].mxu0 }
 0x380   : > { %1588 = vst [vmem:[%s190_s23 + $0x38] sm:$0xff] %v1577_v19 }
 0x381   : > { %1771 = shalt.err (!%p1768_p3)
}
 0x382   : > { %s1772_s10 = scalar_lea.hbm %s3374_s5, 1024  ;;  %s1776_s13 = scalar_lea.hbm %s3422_s4, 2048 }
 0x383   : > { %p1773_p4 = scmp.ne.s32.totalorder %s3374_s5, %s1772_s10  ;;  %p1777_p9 = scmp.lt.u32.totalorder %s3374_s5, %s3422_s4 }
 0x384   : > { %p1778_p10 = scmp.lt.u32.totalorder %s1776_s13, %s1772_s10  ;;  %p1780_p12 = scmp.lt.u32.totalorder %s1772_s10, %s3374_s5 }
 0x385   : > { %p1774_p7 = pnand %p1773_p4, %p1890_p5 }
 0x386   : > { %p1779_p11 = por %p1778_p10, %p1777_p9 }
 0x387   : > { %p1775_p8 = pneg %p1774_p7 }
 0x388   : > { %p1781_p13 = por %p1780_p12, %p1779_p11 }
 0x38a   : > { %p1782_p0 = pnand %p1781_p13, %p1775_p8 }
 0x38c   : > { %1785 = shalt.err (!%p1782_p0)
}
 0x38d   : > { %1709 = dma.vmem_to_hbm [thread:$0]  (%p1890_p5), %s3376_s28, 1024, %s3374_s5, %s1590_s19  }
 0x38e PF: > { %p1715_p1 = scmp.ge.s32.totalorder %s1820_s18, 2  ;;  %s1616_s22 = sand.u32 1, %s1808_s15  }
 0x38f   : > { %s1617_s23 = scalar_lea.sflag [#allocation3], %s1616_s22 }
 0x390   : > { %p1712_p2 = pnand %p1715_p1, %p1894_p6 }
 0x392   : > { %1803 = dma.done.wait (!%p1712_p2), %s1617_s23, 1024  }
 0x393   : > { %1805 = vsyncadd (!%p1712_p2), %s1617_s23, 4294966272  ;;  %p14_p3 = scmp.ge.s32.totalorder %s1877_s21, 4   ;;  %s3541_s15 = smov %s1812_s16 }
 0x394   : > { %s3542_s16 = smov %s1816_s17  ;;  %s3543_s17 = smov %s1888_s24 }
 0x395   : > { %s3544_s18 = smov %s1877_s21  ;;  %16 = sbr.rel (!%p14_p3) target bundleno = 3 (0x3), region = 71 }
 0x39c   :  { %1622 = vsyncpa [#allocation3], 1 }
 0x39d   :  { %1624 = vsyncpa [#allocation3 + $0x1], 1 }

</bundles_post_ra>
